<compile_context>
chip_gen: v6e
topology: v6e:2x2x1
jax: 0.10.0
libtpu: 0.0.40
codegen_flags: <defaults>
</compile_context>

<pallas_src>
import functools

import jax
import jax.numpy as jnp
from jax.experimental import pallas as pl
from jax.experimental.pallas import tpu as pltpu


def _round_up(x, m):
    return ((x + m - 1) // m) * m


def _vmem_capacity_bytes():
    """Physical per-core VMEM (64 MiB v7x, 128 MiB v5e/v6e); conservative fallback."""
    try:
        info = pltpu.get_tpu_info()
        cap = getattr(info, "vmem_capacity_bytes", None)
        if cap:
            return int(cap)
    except Exception:
        pass
    return 64 * 1024 * 1024


def _mlp_kernel_acc(x_ref, w1_ref, b1_ref, w2_ref, b2_ref, o_ref, acc_ref):
    """One (batch-tile, hidden-tile) step of relu(x@W1+b1) @ W2 + b2.

    Used when H is split into >= 2 hidden tiles (hidden = reduction axis of the
    second matmul, last grid axis, 'arbitrary').
    """
    j = pl.program_id(1)
    last = pl.num_programs(1) - 1

    # hidden block: relu(x @ W1[:, jH:jH+th] + b1[jH:jH+th]); epilogue in f32.
    h = jnp.dot(x_ref[...], w1_ref[...], preferred_element_type=jnp.float32)
    h = jnp.maximum(h + b1_ref[...], 0.0)

    # partial = relu_block @ W2[jH:jH+th, :]  (h fed to the MXU in the weight
    # dtype -- intentional bf16 feed on v6e/v7x, exact no-op for f32 weights).
    partial = jnp.dot(h.astype(w2_ref.dtype), w2_ref[...],
                      preferred_element_type=jnp.float32)

    @pl.when(j == 0)
    def _first():
        acc_ref[...] = partial               # no zero-init store / load-of-zeros

    @pl.when(jnp.logical_and(j != 0, j != last))
    def _middle():
        acc_ref[...] += partial

    @pl.when(j == last)
    def _finalize():
        # fuse the last partial + bias + single downcast into the lane-dense store
        o_ref[...] = (acc_ref[...] + partial + b2_ref[...]).astype(o_ref.dtype)


def _mlp_kernel_single(x_ref, w1_ref, b1_ref, w2_ref, b2_ref, o_ref):
    """Single-hidden-tile fast path: no accumulator scratch, direct store."""
    h = jnp.dot(x_ref[...], w1_ref[...], preferred_element_type=jnp.float32)
    h = jnp.maximum(h + b1_ref[...], 0.0)
    out = jnp.dot(h.astype(w2_ref.dtype), w2_ref[...],
                  preferred_element_type=jnp.float32)
    o_ref[...] = (out + b2_ref[...]).astype(o_ref.dtype)


@functools.partial(jax.jit, static_argnames=("block_b", "block_h"))
def remote_seq_forward(x, w1_t, b1, w2_t, b2, *, block_b=None, block_h=None):
    """Applies Sequential(Linear(D,H), ReLU, Linear(H,D)) to x of shape [B, D].

    Weights are stored transposed ([in, out]) so the kernel computes x @ W
    (equivalent to PyTorch's x @ W.T + b).  Biases are [1, out].
    """
    B, D = x.shape
    H = w1_t.shape[1]
    x_isz = x.dtype.itemsize
    w_isz = w1_t.dtype.itemsize
    b_isz = b1.dtype.itemsize

    vmem_cap = _vmem_capacity_bytes()
    vmem_budget = int(vmem_cap * 0.85)           # headroom below physical VMEM
    big_vmem = vmem_budget > 96 * 1024 * 1024    # v5e/v6e (128 MiB) vs v7x (64 MiB)

    # ---- hidden tile: reduction axis of 2nd matmul; lane-dense, must divide H.
    if block_h is None:
        desired_h = 512 if big_vmem else 256     # v7x: trade K-tile for batch rows
        if H % 128 == 0:
            block_h = 128
            for cand in range(min(desired_h, H), 127, -128):
                if H % cand == 0:
                    block_h = cand
                    break
        else:
            block_h = H
    elif block_h % 128 != 0 or H % block_h != 0:
        block_h = H

    # ---- batch tile: THE weight-reuse lever (arithmetic intensity w.r.t. the
    # streamed weights is ~ 2*block_b/w_isz FLOP/byte).
    if block_b is None:
        desired_b = 1024 if w_isz >= 4 else 512
        if big_vmem:
            desired_b *= 2                       # v5e/v6e: spend the 128 MiB on reuse
        if B >= 512:
            # keep >= 2 batch tiles so both v7x TensorCores get work
            block_b = min(desired_b, _round_up(pl.cdiv(B, 2), 8))
        else:
            block_b = min(desired_b, _round_up(B, 8))
    block_b = max(8, min(_round_up(block_b, 8), _round_up(B, 8)))

    def est_bytes(bb, bh):
        e = 2 * bb * D * x_isz            # x tile (double-buffered)
        e += 2 * bb * D * x_isz           # out tile
        e += 2 * D * bh * w_isz           # W1 tile (streamed)
        e += 2 * bh * D * w_isz           # W2 tile (streamed)
        e += 2 * (bh + D) * b_isz         # bias slices
        if H // bh > 1:
            e += bb * D * 4               # f32 accumulator scratch
        return e

    # Shrink until the tiling fits the per-core VMEM budget: block_b first (it
    # only trades reuse), then block_h (only changes DMA granularity).
    min_bb = min(128, _round_up(B, 8))
    while est_bytes(block_b, block_h) > vmem_budget and _round_up(block_b // 2, 8) >= min_bb:
        block_b = _round_up(block_b // 2, 8)
    while est_bytes(block_b, block_h) > vmem_budget and block_h % 256 == 0:
        block_h //= 2

    n_btiles = pl.cdiv(B, block_b)
    n_htiles = H // block_h
    multi = n_htiles > 1
    grid = (n_btiles, n_htiles)

    vmem_limit = int(min(max(int(est_bytes(block_b, block_h) * 1.25),
                             32 * 1024 * 1024),
                         vmem_budget))

    cost = pl.CostEstimate(
        flops=4 * B * D * H,                                   # two matmuls
        transcendentals=0,
        bytes_accessed=int(2 * B * D * x_isz                   # x read + out write
                           + n_btiles * 2 * D * H * w_isz      # weights per batch tile
                           + n_btiles * (H + D) * b_isz))

    kernel = _mlp_kernel_acc if multi else _mlp_kernel_single
    scratch = [pltpu.VMEM((block_b, D), jnp.float32)] if multi else []

    return pl.pallas_call(
        kernel,
        out_shape=jax.ShapeDtypeStruct((B, D), x.dtype),
        grid_spec=pltpu.PrefetchScalarGridSpec(
            num_scalar_prefetch=0,
            grid=grid,
            in_specs=[
                pl.BlockSpec((block_b, D), lambda i, j: (i, 0)),   # x rows (resident over j)
                pl.BlockSpec((D, block_h), lambda i, j: (0, j)),   # W1^T cols (streamed)
                pl.BlockSpec((1, block_h), lambda i, j: (0, j)),   # b1 slice
                pl.BlockSpec((block_h, D), lambda i, j: (j, 0)),   # W2^T rows (streamed)
                pl.BlockSpec((1, D), lambda i, j: (0, 0)),         # b2 (tiny, const)
            ],
            out_specs=pl.BlockSpec((block_b, D), lambda i, j: (i, 0)),
            scratch_shapes=scratch,
        ),
        compiler_params=pltpu.CompilerParams(
            dimension_semantics=("parallel", "arbitrary"),
            vmem_limit_bytes=vmem_limit,
        ),
        cost_estimate=cost,
    )(x, w1_t, b1, w2_t, b2)


def _init_linear(key, fan_in, fan_out, dtype=jnp.float32):
    """Deterministic PyTorch-style init: U(-1/sqrt(fan_in), 1/sqrt(fan_in))."""
    kw, kb = jax.random.split(key)
    bound = 1.0 / float(fan_in) ** 0.5
    # stored already transposed: [in, out]
    w_t = jax.random.uniform(kw, (fan_in, fan_out), dtype, -bound, bound)
    b = jax.random.uniform(kb, (1, fan_out), dtype, -bound, bound)
    return w_t, b


def reference_forward(x, w1_t, b1, w2_t, b2):
    h = jnp.maximum(x @ w1_t + b1, 0.0)
    return h @ w2_t + b2


if __name__ == "__main__":
    # TODO(synk): RRef.to_here()/RPC/threading.Lock are host-side RPC semantics,
    # not device compute; only the wrapped Sequential's forward is implemented.
    key = jax.random.PRNGKey(0)
    k_x, k_l1, k_l2 = jax.random.split(key, 3)

    # Small but lane-dense shapes: batch=256, in/out features=256, hidden=512.
    B, D, H = 256, 256, 512
    x = jax.random.normal(k_x, (B, D), jnp.float32)
    w1_t, b1 = _init_linear(k_l1, D, H)
    w2_t, b2 = _init_linear(k_l2, H, D)

    ref = reference_forward(x, w1_t, b1, w2_t, b2)

    # 1) auto tiling (per-chip, VMEM-aware defaults).
    out = jax.block_until_ready(remote_seq_forward(x, w1_t, b1, w2_t, b2))
    assert out.shape == (B, D)
    assert jnp.allclose(out, ref, atol=2e-3, rtol=2e-3), "f32 auto-tile mismatch"

    # 2) multi-tile path: 2 batch tiles x 4 hidden tiles (exercises the f32
    #    accumulator and the 'parallel' batch axis).
    out2 = jax.block_until_ready(
        remote_seq_forward(x, w1_t, b1, w2_t, b2, block_b=128, block_h=128))
    assert jnp.allclose(out2, ref, atol=2e-3, rtol=2e-3), "f32 multi-tile mismatch"

    # 3) single-hidden-tile fast path (no accumulator scratch).
    out3 = jax.block_until_ready(
        remote_seq_forward(x, w1_t, b1, w2_t, b2, block_b=256, block_h=512))
    assert jnp.allclose(out3, ref, atol=2e-3, rtol=2e-3), "f32 single-tile mismatch"

    # 4) bf16 path with a ragged batch (partial last batch tile -> masked store),
    #    compared loosely against the f32 reference (hidden is intentionally
    #    downcast to bf16 before the 2nd matmul).
    to_bf16 = lambda a: a.astype(jnp.bfloat16)
    Bp = 200
    out_bf16 = jax.block_until_ready(
        remote_seq_forward(to_bf16(x[:Bp]), to_bf16(w1_t), to_bf16(b1),
                           to_bf16(w2_t), to_bf16(b2),
                           block_b=128, block_h=256))
    assert out_bf16.shape == (Bp, D)
    assert jnp.allclose(out_bf16.astype(jnp.float32), ref[:Bp],
                        atol=1e-1, rtol=1e-1), "bf16 mismatch"

    print("KERNEL_OK")
</pallas_src>

<mosaic_0001>
module attributes {stable_mosaic.version = 11 : i64} {
  func.func @_mlp_kernel_acc(%arg0: i32, %arg1: i32, %arg2: memref<256x256xf32, #tpu.memory_space<vmem>>, %arg3: memref<256x256xf32, #tpu.memory_space<vmem>>, %arg4: memref<1x256xf32, #tpu.memory_space<vmem>>, %arg5: memref<256x256xf32, #tpu.memory_space<vmem>>, %arg6: memref<1x256xf32, #tpu.memory_space<vmem>>, %arg7: memref<256x256xf32, #tpu.memory_space<vmem>>, %arg8: memref<256x256xf32, #tpu.memory_space<vmem>>) attributes {dimension_semantics = [#tpu.dimension_semantics<parallel>, #tpu.dimension_semantics<arbitrary>], iteration_bounds = array<i64: 1, 2>, scalar_prefetch = 0 : i64, scratch_operands = 1 : i64, tpu.core_type = #tpu.core_type<tc>, window_params = [{transform_indices = @transform_0, window_bounds = array<i64: 256, 256>}, {transform_indices = @transform_1, window_bounds = array<i64: 256, 256>}, {transform_indices = @transform_2, window_bounds = array<i64: 1, 256>}, {transform_indices = @transform_3, window_bounds = array<i64: 256, 256>}, {pipeline_mode = #tpu.pipeline_mode<synchronous>, transform_indices = @transform_4, window_bounds = array<i64: 1, 256>}, {transform_indices = @transform_5, window_bounds = array<i64: 256, 256>}]} {
    %c0 = arith.constant 0 : index
    %c0_0 = arith.constant 0 : index
    %0 = vector.load %arg2[%c0, %c0_0] : memref<256x256xf32, #tpu.memory_space<vmem>>, vector<256x256xf32>
    %c0_1 = arith.constant 0 : index
    %c0_2 = arith.constant 0 : index
    %1 = vector.load %arg3[%c0_1, %c0_2] : memref<256x256xf32, #tpu.memory_space<vmem>>, vector<256x256xf32>
    %cst = arith.constant dense<0.000000e+00> : vector<256x256xf32>
    %2 = tpu.matmul %0, %1, %cst {dimension_numbers = #tpu.dot_dimension_numbers<[1], [0], [0], [1], [0, 0, 1, 1], [], []>} : vector<256x256xf32>, vector<256x256xf32>, vector<256x256xf32> -> vector<256x256xf32>
    %c0_3 = arith.constant 0 : index
    %c0_4 = arith.constant 0 : index
    %3 = vector.load %arg4[%c0_3, %c0_4] : memref<1x256xf32, #tpu.memory_space<vmem>>, vector<1x256xf32>
    %4 = vector.broadcast %3 : vector<1x256xf32> to vector<256x256xf32>
    %5 = arith.addf %2, %4 : vector<256x256xf32>
    %cst_5 = arith.constant 0.000000e+00 : f32
    %6 = vector.broadcast %cst_5 : f32 to vector<256x256xf32>
    %7 = arith.maximumf %5, %6 : vector<256x256xf32>
    %c0_6 = arith.constant 0 : index
    %c0_7 = arith.constant 0 : index
    %8 = vector.load %arg5[%c0_6, %c0_7] : memref<256x256xf32, #tpu.memory_space<vmem>>, vector<256x256xf32>
    %cst_8 = arith.constant dense<0.000000e+00> : vector<256x256xf32>
    %9 = tpu.matmul %7, %8, %cst_8 {dimension_numbers = #tpu.dot_dimension_numbers<[1], [0], [0], [1], [0, 0, 1, 1], [], []>} : vector<256x256xf32>, vector<256x256xf32>, vector<256x256xf32> -> vector<256x256xf32>
    %c0_i32 = arith.constant 0 : i32
    %10 = arith.cmpi eq, %arg1, %c0_i32 : i32
    %11 = arith.extui %10 : i1 to i32
    %c0_i32_9 = arith.constant 0 : i32
    %12 = arith.cmpi ne, %11, %c0_i32_9 : i32
    scf.if %12 {
      %c0_14 = arith.constant 0 : index
      %c0_15 = arith.constant 0 : index
      %21 = vector.load %arg8[%c0_14, %c0_15] : memref<256x256xf32, #tpu.memory_space<vmem>>, vector<256x256xf32>
      tpu.vector_store %arg8[%c0_14, %c0_15], %9 {strides = array<i32>} : memref<256x256xf32, #tpu.memory_space<vmem>>, vector<256x256xf32>,
    } else {
    }
    %c0_i32_10 = arith.constant 0 : i32
    %13 = arith.cmpi ne, %arg1, %c0_i32_10 : i32
    %c1_i32 = arith.constant 1 : i32
    %14 = arith.cmpi ne, %arg1, %c1_i32 : i32
    %15 = arith.andi %13, %14 : i1
    %16 = arith.extui %15 : i1 to i32
    %c0_i32_11 = arith.constant 0 : i32
    %17 = arith.cmpi ne, %16, %c0_i32_11 : i32
    scf.if %17 {
      %c0_14 = arith.constant 0 : index
      %c0_15 = arith.constant 0 : index
      %21 = vector.load %arg8[%c0_14, %c0_15] : memref<256x256xf32, #tpu.memory_space<vmem>>, vector<256x256xf32>
      %22 = arith.addf %21, %9 : vector<256x256xf32>
      %c0_16 = arith.constant 0 : index
      %c0_17 = arith.constant 0 : index
      %23 = vector.load %arg8[%c0_16, %c0_17] : memref<256x256xf32, #tpu.memory_space<vmem>>, vector<256x256xf32>
      tpu.vector_store %arg8[%c0_16, %c0_17], %22 {strides = array<i32>} : memref<256x256xf32, #tpu.memory_space<vmem>>, vector<256x256xf32>,
    } else {
    }
    %c1_i32_12 = arith.constant 1 : i32
    %18 = arith.cmpi eq, %arg1, %c1_i32_12 : i32
    %19 = arith.extui %18 : i1 to i32
    %c0_i32_13 = arith.constant 0 : i32
    %20 = arith.cmpi ne, %19, %c0_i32_13 : i32
    scf.if %20 {
      %c0_14 = arith.constant 0 : index
      %c0_15 = arith.constant 0 : index
      %21 = vector.load %arg8[%c0_14, %c0_15] : memref<256x256xf32, #tpu.memory_space<vmem>>, vector<256x256xf32>
      %22 = arith.addf %21, %9 : vector<256x256xf32>
      %c0_16 = arith.constant 0 : index
      %c0_17 = arith.constant 0 : index
      %23 = vector.load %arg6[%c0_16, %c0_17] : memref<1x256xf32, #tpu.memory_space<vmem>>, vector<1x256xf32>
      %24 = vector.broadcast %23 : vector<1x256xf32> to vector<256x256xf32>
      %25 = arith.addf %22, %24 : vector<256x256xf32>
      %c0_18 = arith.constant 0 : index
      %c0_19 = arith.constant 0 : index
      %26 = vector.load %arg7[%c0_18, %c0_19] : memref<256x256xf32, #tpu.memory_space<vmem>>, vector<256x256xf32>
      tpu.vector_store %arg7[%c0_18, %c0_19], %25 {strides = array<i32>} : memref<256x256xf32, #tpu.memory_space<vmem>>, vector<256x256xf32>,
    } else {
    }
    return
  }
  func.func @transform_0(%arg0: i32, %arg1: i32) -> (i32, i32) {
    %c0_i32 = arith.constant 0 : i32
    %c0_i32_0 = arith.constant 0 : i32
    return %arg0, %c0_i32 : i32, i32
  }
  func.func @transform_1(%arg0: i32, %arg1: i32) -> (i32, i32) {
    %c0_i32 = arith.constant 0 : i32
    %c0_i32_0 = arith.constant 0 : i32
    return %c0_i32, %arg1 : i32, i32
  }
  func.func @transform_2(%arg0: i32, %arg1: i32) -> (i32, i32) {
    %c0_i32 = arith.constant 0 : i32
    %c0_i32_0 = arith.constant 0 : i32
    return %c0_i32, %arg1 : i32, i32
  }
  func.func @transform_3(%arg0: i32, %arg1: i32) -> (i32, i32) {
    %c0_i32 = arith.constant 0 : i32
    %c0_i32_0 = arith.constant 0 : i32
    return %arg1, %c0_i32 : i32, i32
  }
  func.func @transform_4(%arg0: i32, %arg1: i32) -> (i32, i32) {
    %c0_i32 = arith.constant 0 : i32
    %c0_i32_0 = arith.constant 0 : i32
    %c0_i32_1 = arith.constant 0 : i32
    return %c0_i32, %c0_i32_0 : i32, i32
  }
  func.func @transform_5(%arg0: i32, %arg1: i32) -> (i32, i32) {
    %c0_i32 = arith.constant 0 : i32
    %c0_i32_0 = arith.constant 0 : i32
    return %arg0, %c0_i32 : i32, i32
  }
}

</mosaic_0001>

<bundles_post_ra>
// kernel: remote_seq_forward.1
= control target key start
LH: loop header
LB: loop body
LE: loop exit
PB: predicated region body
PF: predicated region fallthrough
CT: control target
= control target key end

     0   :  { %s2951_s0 = inlined_call_operand.hbm [shape: f32[256,256], index: 0, kind: input, shape index: {}]   ;;  %s2952_s1 = inlined_call_operand.hbm [shape: f32[256,512], index: 1, kind: input, shape index: {}]   ;;  %s2953_s2 = inlined_call_operand.hbm [shape: f32[1,512], index: 2, kind: input, shape index: {}]   ;;  %s2954_s3 = inlined_call_operand.hbm [shape: f32[512,256], index: 3, kind: input, shape index: {}]   ;;  %s2955_s4 = inlined_call_operand.vmem [shape: f32[1,256], index: 4, kind: input, shape index: {}]   ;;  %s2956_s5 = inlined_call_operand.hbm [shape: f32[256,256], index: 5, kind: output, shape index: {}]  }
   0x1   :  { %2991 = sst [smem:[#allocation41_spill]] %s2951_s0 }
   0x2   :  { %10 = vsyncpa [#allocation4], 0 }
   0x3   :  { %11 = vsyncpa [#allocation7], 0 }
   0x4   :  { %13 = vsyncpa [#allocation7 + $0x1], 0 }
   0x5   :  { %14 = vsyncpa [#allocation10], 0 }
   0x6   :  { %16 = vsyncpa [#allocation10 + $0x1], 0 }
   0x7   :  { %17 = vsyncpa [#allocation5], 0  ;;  %s2159_s18 = smov 0   ;;  %s2161_s19 = smov 0  }
   0x8   :  { %s2163_s20 = smov 0   ;;  %s2165_s21 = smov 0  }
   0x9   :  { %s2167_s22 = smov 0   ;;  %s2169_s23 = smov 0  }
   0xa LB: > { %s32_s24 = sadd.s32 1, %s2113_s22  ;;  %s68_s25 = sadd.s32 1, %s2105_s20  ;;  %s2117_s23 = sphi %s2169_s23, %s23_s23   ;;  %s2113_s22 = sphi %s2167_s22, %s3076_s22   ;;  %s2109_s21 = sphi %s2165_s21, %s3075_s21   ;;  %s2105_s20 = sphi %s2163_s20, %s3074_s20   ;;  %s2101_s19 = sphi %s2161_s19, %s3073_s19   ;;  %s2097_s18 = sphi %s2159_s18, %s3072_s18  }
   0xb   : > { %p33_p0 = scmp.ge.s32.totalorder %s32_s24, 2  ;;  %p75_p1 = scmp.ne.s32.totalorder %s2105_s20, %s2101_s19 }
   0xc   : > { %p76_p2 = scmp.eq.s32.totalorder %s2117_s23, 0  ;;  %p1862_p5 = scmp.lt.s32.totalorder %s2117_s23, 2 }
   0xd   : > { %s3078_s24 = smov (%p33_p0, %s32_s24), 0  ;;  %s224_s28 = sand.u32 1, %s2117_s23  }
   0xe   : > { %p2196_p3 = por %p76_p2, %p75_p1  ;;  %s65_s27 = ssub.s32 %s2113_s22, %s3078_s24 }
   0xf   : > { %p66_p4 = scmp.eq.s32.totalorder %s65_s27, 0  ;;  %s2205_s29 = sand.u32 1, %s2105_s20  }
  0x10   : > { %s2957_s6 = sshll.u32 %s2205_s29, 9  ;;  %s1829_s7 = sshll.u32 %s2113_s22, 8 }
  0x11   : > { %s2208_s30 = scalar_select %p66_p4, %s2105_s20, %s68_s25  }
  0x12   : > { %s234_s10 = scalar_lea.hbm %s2952_s1, %s1829_s7  ;;  %s228_s11 = scalar_lea.vmem [#allocation6], %s2957_s6 }
  0x13   : > { %s235_s12 = sshll.u32 %s228_s11, 4  ;;  %p2219_p6 = pnand %p1862_p5, %p2196_p3  ;;  %s236_s12 = int_to_ptr.vmem [resolvable:$true] %s235_s12 }
  0x14   : > { %s2223_s14 = scalar_lea.sflag [#allocation7], %s224_s28  ;;  %s1934_s15 = scalar_lea.vmem %s236_s12, 8192 }
  0x15   : > { %p2958_p7 = pneg %p2219_p6  ;;  %p1935_p8 = scmp.ne.s32.totalorder %s236_s12, %s1934_s15 }
  0x16   : > { %s2119_s16 = smov [#allocation6]  }
  0x17   : > { %p1937_p9 = pnand %p1935_p8, %p2958_p7  ;;  %s1939_s17 = sshll.u32 %s2119_s16, 4  ;;  %s1940_s17 = int_to_ptr.vmem [resolvable:$false] %s1939_s17 }
  0x18   : > { %s1941_s25 = scalar_lea.vmem %s1940_s17, 16384  ;;  %p1942_p11 = scmp.lt.s32.totalorder %s236_s12, %s1940_s17 }
  0x19   : > { %p1938_p10 = pneg %p1937_p9  ;;  %p1943_p12 = scmp.lt.s32.totalorder %s1941_s25, %s1934_s15 }
  0x1b   : > { %p1944_p13 = por %p1943_p12, %p1942_p11 }
  0x1d   : > { %p1945_p0 = pnand %p1944_p13, %p1938_p10 }
  0x1f   : > { %1948 = shalt.err (!%p1945_p0)
}
  0x20   : > { %s2120_s26 = smov 512   ;;  %s2961_s27 = smov 256  }
  0x21   : > { %s2962_s28 = smov 16   ;;  %s2236_s7 = sadd.s32 4294967295, %s2117_s23  }
  0x22   : > { %1854 = dma.hbm_to_vmem [thread:$0]  (!%p2219_p6), %s234_s10, 8192, %s236_s12, %s2223_s14, %s2120_s26, %s2961_s27, %s2962_s28  }
  0x23   : > { %p81_p1 = scmp.ne.s32.totalorder %s2101_s19, %s2097_s18  ;;  %p2959_p2 = scmp.eq.s32.totalorder %s2236_s7, 0 }
  0x24   : > { %p1805_p3 = scmp.ge.s32.totalorder %s2117_s23, 1  ;;  %p191_p4 = scmp.lt.s32.totalorder %s2117_s23, 3 }
  0x25   : > { %p2245_p5 = por %p2959_p2, %p81_p1  ;;  %s2123_s10 = smov [#allocation3]  }
  0x26   : > { %p2249_p8 = pnand %p1805_p3, %p191_p4  ;;  %s207_s11 = sshll.u32 %s2123_s10, 4  ;;  %s208_s11 = int_to_ptr.vmem [resolvable:$true] %s207_s11 }
  0x27   : > { %s2994_s8 = scalar_select %p2245_p5, 1, 0 }
  0x28   : > { %s1811_s12 = sshll.u32 %s2205_s29, 1  ;;  %p1847_p9 = pneg %p2249_p8 }
  0x29   : > { %s1830_s18 = sshll.u32 %s2113_s22, 5  ;;  %s249_s15 = scalar_lea.vmem [#allocation8], %s1811_s12 }
  0x2a   : > { %s257_s16 = sshll.u32 %s249_s15, 4  ;;  %p1848_p10 = pnand %p1847_p9, %p2959_p2  ;;  %s258_s16 = int_to_ptr.vmem [resolvable:$true] %s257_s16 }
  0x2b   : > { %s255_s26 = scalar_lea.hbm %s2953_s2, %s1830_s18  ;;  %s1960_s6 = scalar_lea.vmem %s208_s11, 8192 }
  0x2c   : > { %p1951_p11 = pneg %p1848_p10  ;;  %p1961_p12 = scmp.ne.s32.totalorder %s208_s11, %s1960_s6 }
  0x2d   : > { %p1968_p1 = scmp.lt.s32.totalorder %s208_s11, %s208_s11  ;;  %p1969_p3 = scmp.lt.s32.totalorder %s1960_s6, %s1960_s6 }
  0x2e   : > { %p1963_p13 = pnand %p1961_p12, %p1951_p11 }
  0x2f   : > { %p1970_p4 = por %p1969_p3, %p1968_p1 }
  0x30   : > { %p1964_p0 = pneg %p1963_p13 }
  0x32   : > { %p1971_p7 = pnand %p1970_p4, %p1964_p0 }
  0x34   : > { %1974 = shalt.err (!%p1971_p7)
}
  0x35   : > { %s2996_s0 = sld [smem:[#allocation41_spill]]  ;;  %s1988_s18 = scalar_lea.vmem %s258_s16, 32 }
  0x36   : > { %p1989_p9 = scmp.ne.s32.totalorder %s258_s16, %s1988_s18  ;;  %p2997_p2 = pneg %p2219_p6 }
  0x37   : > { %s2124_s15 = smov [#allocation8]  }
  0x38   : > { %p1991_p5 = pnand %p1989_p9, %p2997_p2  ;;  %s1993_s17 = sshll.u32 %s2124_s15, 4  ;;  %s1994_s17 = int_to_ptr.vmem [resolvable:$false] %s1993_s17 }
  0x39   : > { %s1995_s6 = scalar_lea.vmem %s1994_s17, 64  ;;  %p1996_p12 = scmp.lt.s32.totalorder %s258_s16, %s1994_s17 }
  0x3a   : > { %p1992_p11 = pneg %p1991_p5  ;;  %p1997_p7 = scmp.lt.s32.totalorder %s1995_s6, %s1988_s18 }
  0x3b   : > { %1850 = dma.hbm_to_vmem [thread:$0]  (!%p1848_p10), %s2996_s0, 8192, %s208_s11, [#allocation4], %s2961_s27, %s2961_s27, %s2962_s28  }
  0x3c   : > { %p1998_p13 = por %p1997_p7, %p1996_p12 }
  0x3e   : > { %p1999_p0 = pnand %p1998_p13, %p1992_p11 }
  0x40   : > { %2002 = shalt.err (!%p1999_p0)
}
  0x41   : > { %1857 = dma.hbm_to_vmem [thread:$0]  (!%p2219_p6), %s255_s26, 32, %s258_s16, %s2223_s14  }
  0x42   : > { %s1832_s11 = sshll.u32 %s2113_s22, 13  ;;  %s2998_s25 = sshll.u32 %s2205_s29, 9 }
  0x43   : > { %s268_s10 = scalar_lea.vmem [#allocation9], %s2998_s25  ;;  %s275_s17 = scalar_lea.hbm %s2954_s3, %s1832_s11 }
  0x44   : > { %s276_s12 = sshll.u32 %s268_s10, 4  ;;  %s265_s18 = scalar_lea.sflag [#allocation10], %s2205_s29  ;;  %s277_s12 = int_to_ptr.vmem [resolvable:$true] %s276_s12 }
  0x45   : > { %s2016_s6 = scalar_lea.vmem %s277_s12, 8192  ;;  %p2999_p5 = pneg %p2219_p6 }
  0x46   : > { %p2017_p2 = scmp.ne.s32.totalorder %s277_s12, %s2016_s6  ;;  %s2125_s28 = smov [#allocation9]  }
  0x47   : > { %s2021_s0 = sshll.u32 %s2125_s28, 4  ;;  %s2022_s0 = int_to_ptr.vmem [resolvable:$false] %s2021_s0 }
  0x48   : > { %p2019_p10 = pnand %p2017_p2, %p2999_p5  ;;  %s2023_s14 = scalar_lea.vmem %s2022_s0, 16384 }
  0x49   : > { %p2024_p3 = scmp.lt.s32.totalorder %s277_s12, %s2022_s0  ;;  %p2025_p4 = scmp.lt.s32.totalorder %s2023_s14, %s2016_s6 }
  0x4a   : > { %p2020_p1 = pneg %p2019_p10 }
  0x4b   : > { %p2026_p9 = por %p2025_p4, %p2024_p3 }
  0x4d   : > { %p2027_p11 = pnand %p2026_p9, %p2020_p1 }
  0x4f   : > { %2030 = shalt.err (!%p2027_p11)
}
  0x50   : > { %s3000_s27 = smov 16   ;;  %s3001_s16 = smov 256  }
  0x51   : > { %1860 = dma.hbm_to_vmem [thread:$0]  (!%p2219_p6), %s275_s17, 8192, %s277_s12, %s265_s18, %s3001_s16, %s3001_s16, %s3000_s27  }
  0x52   : > { %288 = sbr.rel (%p2249_p8) target bundleno = 829 (0x33d), region = 40 }
  0x57   : > { %p3002_p12 = scmp.eq.s32.totalorder %s2236_s7, 0 }
  0x59   : > { %2080 = dma.done.wait (%p3002_p12), [#allocation4], 8192   ;;  %p3003_p7 = pmov %p3002_p12 }
  0x5a   : > { %s294_s0 = sand.u32 1, %s2236_s7   ;;  %s296_s29 = sand.u32 1, %s2101_s19  }
  0x5b   : > { %2082 = vsyncadd (%p3003_p7), [#allocation4], 4294959104  ;;  %s1820_s28 = sshll.u32 %s296_s29, 9  ;;  %s295_s13 = scalar_lea.sflag [#allocation7], %s294_s0 }
  0x5c   : > { %s2297_s26 = scalar_lea.vmem [#allocation6], %s1820_s28  ;;  %p3004_p13 = scmp.ne.s32.totalorder %s2994_s8, 0 }
  0x5e   : > { %2084 = dma.done.wait (%p3004_p13), %s295_s13, 8224  }
  0x5f   : > { %2086 = vsyncadd (%p3004_p13), %s295_s13, 4294959072  ;;  %s1821_s9 = sshll.u32 %s296_s29, 1  ;;  %s313_s25 = scalar_lea.sflag [#allocation10], %s296_s29 }
  0x60   : > { %s2303_s11 = scalar_lea.vmem [#allocation8], %s1821_s9  ;;  %s2305_s10 = scalar_lea.vmem [#allocation9], %s1820_s28 }
  0x61   : > { %2088 = dma.done.wait (%p3004_p13), %s313_s25, 8192  }
  0x62   : > { %2090 = vsyncadd (%p3004_p13), %s313_s25, 4294959104  ;;  %v448_v0 = vld [vmem:[%s2297_s26 + $0xf8] sm:$0xff]  ;;  %v447_v1 = vld [vmem:[%s2297_s26 + $0xf0] sm:$0xff]  ;;  %p1823_p6 = scmp.ne.s32.totalorder %s2109_s21, 0 }
  0x63   : > { %v446_v2 = vld [vmem:[%s2297_s26 + $0xe8] sm:$0xff]  ;;  %493 = vmatprep.subr.mxu0 %v448_v0  ;;  %v445_v3 = vld [vmem:[%s2297_s26 + $0xe0] sm:$0xff]  ;;  %v444_v4 = vld [vmem:[%s2297_s26 + $0xd8] sm:$0xff] }
  0x64   : > { %494 = vmatpush1.msra.mxu0 %v447_v1  ;;  %v443_v5 = vld [vmem:[%s2297_s26 + $0xd0] sm:$0xff]  ;;  %v442_v6 = vld [vmem:[%s2297_s26 + $0xc8] sm:$0xff]  ;;  %v441_v7 = vld [vmem:[%s2297_s26 + $0xc0] sm:$0xff] }
  0x65   : > { %495 = vmatprep.subr.mxu0 %v446_v2  ;;  %v440_v8 = vld [vmem:[%s2297_s26 + $0xb8] sm:$0xff]  ;;  %v439_v9 = vld [vmem:[%s2297_s26 + $0xb0] sm:$0xff]  ;;  %v438_v10 = vld [vmem:[%s2297_s26 + $0xa8] sm:$0xff] }
  0x66   : > { %496 = vmatpush1.msra.mxu0 %v445_v3  ;;  %v437_v11 = vld [vmem:[%s2297_s26 + $0xa0] sm:$0xff]  ;;  %v436_v12 = vld [vmem:[%s2297_s26 + $0x98] sm:$0xff]  ;;  %v435_v13 = vld [vmem:[%s2297_s26 + $0x90] sm:$0xff] }
  0x67   : > { %497 = vmatprep.subr.mxu0 %v444_v4  ;;  %v434_v14 = vld [vmem:[%s2297_s26 + $0x88] sm:$0xff]  ;;  %v433_v15 = vld [vmem:[%s2297_s26 + $0x80] sm:$0xff]  ;;  %v432_v16 = vld [vmem:[%s2297_s26 + $0x78] sm:$0xff] }
  0x68   : > { %498 = vmatpush1.msra.mxu0 %v443_v5  ;;  %v431_v17 = vld [vmem:[%s2297_s26 + $0x70] sm:$0xff]  ;;  %v430_v18 = vld [vmem:[%s2297_s26 + $0x68] sm:$0xff]  ;;  %v429_v19 = vld [vmem:[%s2297_s26 + $0x60] sm:$0xff] }
  0x69   : > { %499 = vmatprep.subr.mxu0 %v442_v6  ;;  %v428_v20 = vld [vmem:[%s2297_s26 + $0x58] sm:$0xff]  ;;  %v427_v21 = vld [vmem:[%s2297_s26 + $0x50] sm:$0xff]  ;;  %v426_v22 = vld [vmem:[%s2297_s26 + $0x48] sm:$0xff] }
  0x6a   : > { %500 = vmatpush1.msra.mxu0 %v441_v7  ;;  %v425_v23 = vld [vmem:[%s2297_s26 + $0x40] sm:$0xff]  ;;  %v354_v24 = vld [vmem:[#allocation3 + $0x8] sm:$0xff]  ;;  %v424_v25 = vld [vmem:[%s2297_s26 + $0x38] sm:$0xff] }
  0x6b   : > { %501 = vmatprep.subr.mxu0 %v440_v8  ;;  %557 = vmatprep.mubr.f32.mxu0 %v354_v24  ;;  %v423_v26 = vld [vmem:[%s2297_s26 + $0x30] sm:$0xff]  ;;  %v422_v27 = vld [vmem:[%s2297_s26 + $0x28] sm:$0xff]  ;;  %v421_v28 = vld [vmem:[%s2297_s26 + $0x20] sm:$0xff] }
  0x6c   : > { %502 = vmatpush1.msra.mxu0 %v439_v9  ;;  %v420_v29 = vld [vmem:[%s2297_s26 + $0x18] sm:$0xff]  ;;  %v419_v30 = vld [vmem:[%s2297_s26 + $0x10] sm:$0xff]  ;;  %v418_v31 = vld [vmem:[%s2297_s26 + $0x8] sm:$0xff] }
  0x6d   : > { %503 = vmatprep.subr.mxu0 %v438_v10  ;;  %v417_v32 = vld [vmem:[%s2297_s26] sm:$0xff]  ;;  %v480_v33 = vld [vmem:[%s2297_s26 + $0x1f8] sm:$0xff]  ;;  %v479_v34 = vld [vmem:[%s2297_s26 + $0x1f0] sm:$0xff] }
  0x6e   : > { %504 = vmatpush1.msra.mxu0 %v437_v11  ;;  %v478_v35 = vld [vmem:[%s2297_s26 + $0x1e8] sm:$0xff]  ;;  %v477_v36 = vld [vmem:[%s2297_s26 + $0x1e0] sm:$0xff]  ;;  %v476_v37 = vld [vmem:[%s2297_s26 + $0x1d8] sm:$0xff] }
  0x6f   : > { %505 = vmatprep.subr.mxu0 %v436_v12  ;;  %v475_v38 = vld [vmem:[%s2297_s26 + $0x1d0] sm:$0xff]  ;;  %v474_v39 = vld [vmem:[%s2297_s26 + $0x1c8] sm:$0xff]  ;;  %v473_v40 = vld [vmem:[%s2297_s26 + $0x1c0] sm:$0xff] }
  0x70   : > { %506 = vmatpush1.msra.mxu0 %v435_v13  ;;  %v472_v41 = vld [vmem:[%s2297_s26 + $0x1b8] sm:$0xff]  ;;  %v471_v42 = vld [vmem:[%s2297_s26 + $0x1b0] sm:$0xff]  ;;  %v470_v43 = vld [vmem:[%s2297_s26 + $0x1a8] sm:$0xff] }
  0x71   : > { %507 = vmatprep.subr.mxu0 %v434_v14  ;;  %v469_v44 = vld [vmem:[%s2297_s26 + $0x1a0] sm:$0xff]  ;;  %v468_v45 = vld [vmem:[%s2297_s26 + $0x198] sm:$0xff]  ;;  %v467_v46 = vld [vmem:[%s2297_s26 + $0x190] sm:$0xff] }
  0x72   : > { %508 = vmatpush1.msra.mxu0 %v433_v15  ;;  %v466_v47 = vld [vmem:[%s2297_s26 + $0x188] sm:$0xff]  ;;  %v465_v48 = vld [vmem:[%s2297_s26 + $0x180] sm:$0xff]  ;;  %v464_v49 = vld [vmem:[%s2297_s26 + $0x178] sm:$0xff] }
  0x73   : > { %509 = vmatprep.subr.mxu0 %v432_v16  ;;  %v463_v50 = vld [vmem:[%s2297_s26 + $0x170] sm:$0xff]  ;;  %v462_v51 = vld [vmem:[%s2297_s26 + $0x168] sm:$0xff]  ;;  %v461_v52 = vld [vmem:[%s2297_s26 + $0x160] sm:$0xff] }
  0x74   : > { %510 = vmatpush1.msra.mxu0 %v431_v17  ;;  %v460_v53 = vld [vmem:[%s2297_s26 + $0x158] sm:$0xff]  ;;  %v459_v54 = vld [vmem:[%s2297_s26 + $0x150] sm:$0xff]  ;;  %v458_v55 = vld [vmem:[%s2297_s26 + $0x148] sm:$0xff] }
  0x75   : > { %511 = vmatprep.subr.mxu0 %v430_v18  ;;  %v457_v56 = vld [vmem:[%s2297_s26 + $0x140] sm:$0xff]  ;;  %v456_v57 = vld [vmem:[%s2297_s26 + $0x138] sm:$0xff]  ;;  %v455_v58 = vld [vmem:[%s2297_s26 + $0x130] sm:$0xff] }
  0x76   : > { %512 = vmatpush1.msra.mxu0 %v429_v19  ;;  %v454_v59 = vld [vmem:[%s2297_s26 + $0x128] sm:$0xff]  ;;  %v453_v60 = vld [vmem:[%s2297_s26 + $0x120] sm:$0xff]  ;;  %v452_v61 = vld [vmem:[%s2297_s26 + $0x118] sm:$0xff] }
  0x77   : > { %513 = vmatprep.subr.mxu0 %v428_v20  ;;  %v451_v62 = vld [vmem:[%s2297_s26 + $0x110] sm:$0xff]  ;;  %v450_v63 = vld [vmem:[%s2297_s26 + $0x108] sm:$0xff]  ;;  %v449_v0 = vld [vmem:[%s2297_s26 + $0x100] sm:$0xff] }
  0x78   : > { %514 = vmatpush1.msra.mxu0 %v427_v21  ;;  %v845_v1 = vld [vmem:[%s2305_s10 + $0xf8] sm:$0xff]  ;;  %v844_v2 = vld [vmem:[%s2305_s10 + $0xf0] sm:$0xff]  ;;  %v843_v3 = vld [vmem:[%s2305_s10 + $0xe8] sm:$0xff] }
  0x79   : > { %515 = vmatprep.subr.mxu0 %v426_v22  ;;  %v353_v4 = vld [vmem:[#allocation3] sm:$0xff]  ;;  %878 = vmatprep.subr.mxu1 %v845_v1  ;;  %v356_v6 = vld [vmem:[#allocation3 + $0x18] sm:$0xff]  ;;  %v839_v9 = vld [vmem:[%s2305_s10 + $0xc8] sm:$0xff] }
  0x7a   : > { %516 = vmatpush1.msra.mxu0 %v425_v23  ;;  %v842_v5 = vld [vmem:[%s2305_s10 + $0xe0] sm:$0xff]  ;;  %879 = vmatpush1.msra.mxu1 %v844_v2  ;;  %v841_v7 = vld [vmem:[%s2305_s10 + $0xd8] sm:$0xff]  ;;  %v840_v8 = vld [vmem:[%s2305_s10 + $0xd0] sm:$0xff] }
  0x7b   : > { %517 = vmatprep.subr.mxu0 %v424_v25  ;;  %880 = vmatprep.subr.mxu1 %v843_v3  ;;  %v355_v10 = vld [vmem:[#allocation3 + $0x10] sm:$0xff]  ;;  %v838_v11 = vld [vmem:[%s2305_s10 + $0xc0] sm:$0xff]  ;;  %v837_v13 = vld [vmem:[%s2305_s10 + $0xb8] sm:$0xff] }
  0x7c   : > { %518 = vmatpush1.msra.mxu0 %v423_v26  ;;  %881 = vmatpush1.msra.mxu1 %v842_v5  ;;  %v358_v12 = vld [vmem:[#allocation3 + $0x28] sm:$0xff]  ;;  %v836_v14 = vld [vmem:[%s2305_s10 + $0xb0] sm:$0xff]  ;;  %v357_v16 = vld [vmem:[#allocation3 + $0x20] sm:$0xff] }
  0x7d   : > { %519 = vmatprep.subr.mxu0 %v422_v27  ;;  %882 = vmatprep.subr.mxu1 %v841_v7  ;;  %v835_v15 = vld [vmem:[%s2305_s10 + $0xa8] sm:$0xff]  ;;  %v834_v17 = vld [vmem:[%s2305_s10 + $0xa0] sm:$0xff]  ;;  %v360_v18 = vld [vmem:[#allocation3 + $0x38] sm:$0xff] }
  0x7e   : > { %520 = vmatpush1.msra.mxu0 %v421_v28  ;;  %883 = vmatpush1.msra.mxu1 %v840_v8  ;;  %v833_v19 = vld [vmem:[%s2305_s10 + $0x98] sm:$0xff]  ;;  %v832_v20 = vld [vmem:[%s2305_s10 + $0x90] sm:$0xff]  ;;  %v831_v21 = vld [vmem:[%s2305_s10 + $0x88] sm:$0xff] }
  0x7f   : > { %521 = vmatprep.subr.mxu0 %v420_v29  ;;  %884 = vmatprep.subr.mxu1 %v839_v9  ;;  %v359_v22 = vld [vmem:[#allocation3 + $0x30] sm:$0xff]  ;;  %v830_v23 = vld [vmem:[%s2305_s10 + $0x80] sm:$0xff]  ;;  %v829_v25 = vld [vmem:[%s2305_s10 + $0x78] sm:$0xff] }
  0x80   : > { %522 = vmatpush1.msra.mxu0 %v419_v30  ;;  %885 = vmatpush1.msra.mxu1 %v838_v11  ;;  %v362_v24 = vld [vmem:[#allocation3 + $0x48] sm:$0xff]  ;;  %v828_v26 = vld [vmem:[%s2305_s10 + $0x70] sm:$0xff]  ;;  %v361_v28 = vld [vmem:[#allocation3 + $0x40] sm:$0xff] }
  0x81   : > { %523 = vmatprep.subr.mxu0 %v418_v31  ;;  %886 = vmatprep.subr.mxu1 %v837_v13  ;;  %v827_v27 = vld [vmem:[%s2305_s10 + $0x68] sm:$0xff]  ;;  %v826_v29 = vld [vmem:[%s2305_s10 + $0x60] sm:$0xff]  ;;  %v364_v30 = vld [vmem:[#allocation3 + $0x58] sm:$0xff] }
  0x82   : > { %524 = vmatpush1.msra.mxu0 %v417_v32  ;;  %887 = vmatpush1.msra.mxu1 %v836_v14  ;;  %v825_v31 = vld [vmem:[%s2305_s10 + $0x58] sm:$0xff]  ;;  %v824_v32 = vld [vmem:[%s2305_s10 + $0x50] sm:$0xff]  ;;  %v866_v1 = vld [vmem:[%s2305_s10 + $0x1a0] sm:$0xff] }
  0x83   : > { %525 = vmatprep.subr.mxu0 %v480_v33  ;;  %888 = vmatprep.subr.mxu1 %v835_v15  ;;  %v823_v33 = vld [vmem:[%s2305_s10 + $0x48] sm:$0xff]  ;;  %v376_v2 = vld [vmem:[#allocation3 + $0xb8] sm:$0xff]  ;;  %v862_v7 = vld [vmem:[%s2305_s10 + $0x180] sm:$0xff] }
  0x84   : > { %526 = vmatpush2.msra.mxu0 %v479_v34  ;;  %889 = vmatpush1.msra.mxu1 %v834_v17  ;;  %v363_v34 = vld [vmem:[#allocation3 + $0x50] sm:$0xff]  ;;  %v865_v3 = vld [vmem:[%s2305_s10 + $0x198] sm:$0xff]  ;;  %v378_v8 = vld [vmem:[#allocation3 + $0xc8] sm:$0xff] }
  0x85   : > { %527 = vmatprep.subr.mxu0 %v478_v35  ;;  %890 = vmatprep.subr.mxu1 %v833_v19  ;;  %v822_v35 = vld [vmem:[%s2305_s10 + $0x40] sm:$0xff]  ;;  %v863_v5 = vld [vmem:[%s2305_s10 + $0x188] sm:$0xff]  ;;  %v861_v9 = vld [vmem:[%s2305_s10 + $0x178] sm:$0xff] }
  0x86   : > { %528 = vmatpush2.msra.mxu0 %v477_v36  ;;  %891 = vmatpush1.msra.mxu1 %v832_v20  ;;  %v366_v36 = vld [vmem:[#allocation3 + $0x68] sm:$0xff]  ;;  %v380_v14 = vld [vmem:[#allocation3 + $0xd8] sm:$0xff] }
  0x87   : > { %529 = vmatprep.subr.mxu0 %v476_v37  ;;  %892 = vmatprep.subr.mxu1 %v831_v21  ;;  %v821_v37 = vld [vmem:[%s2305_s10 + $0x38] sm:$0xff]  ;;  %v859_v11 = vld [vmem:[%s2305_s10 + $0x168] sm:$0xff]  ;;  %v858_v13 = vld [vmem:[%s2305_s10 + $0x160] sm:$0xff] }
  0x88   : > { %530 = vmatpush2.msra.mxu0 %v475_v38  ;;  %893 = vmatpush1.msra.mxu1 %v830_v23  ;;  %v820_v38 = vld [vmem:[%s2305_s10 + $0x30] sm:$0xff]  ;;  %v857_v15 = vld [vmem:[%s2305_s10 + $0x158] sm:$0xff]  ;;  %v855_v17 = vld [vmem:[%s2305_s10 + $0x148] sm:$0xff] }
  0x89   : > { %531 = vmatprep.subr.mxu0 %v474_v39  ;;  %894 = vmatprep.subr.mxu1 %v829_v25  ;;  %v819_v39 = vld [vmem:[%s2305_s10 + $0x28] sm:$0xff]  ;;  %v854_v19 = vld [vmem:[%s2305_s10 + $0x140] sm:$0xff] }
  0x8a   : > { %532 = vmatpush2.msra.mxu0 %v473_v40  ;;  %895 = vmatpush1.msra.mxu1 %v828_v26  ;;  %v365_v40 = vld [vmem:[#allocation3 + $0x60] sm:$0xff]  ;;  %v382_v20 = vld [vmem:[#allocation3 + $0xe8] sm:$0xff]  ;;  %v383_v23 = vld [vmem:[#allocation3 + $0xf0] sm:$0xff] }
  0x8b   : > { %533 = vmatprep.subr.mxu0 %v472_v41  ;;  %896 = vmatprep.subr.mxu1 %v827_v27  ;;  %v818_v41 = vld [vmem:[%s2305_s10 + $0x20] sm:$0xff]  ;;  %v388_v26 = vld [vmem:[#allocation3 + $0x118] sm:$0xff] }
  0x8c   : > { %534 = vmatpush2.msra.mxu0 %v471_v42  ;;  %897 = vmatpush1.msra.mxu1 %v826_v29  ;;  %v368_v42 = vld [vmem:[#allocation3 + $0x78] sm:$0xff]  ;;  %v381_v21 = vld [vmem:[#allocation3 + $0xe0] sm:$0xff]  ;;  %v387_v29 = vld [vmem:[#allocation3 + $0x110] sm:$0xff] }
  0x8d   : > { %535 = vmatprep.subr.mxu0 %v470_v43  ;;  %898 = vmatprep.subr.mxu1 %v825_v31  ;;  %v817_v43 = vld [vmem:[%s2305_s10 + $0x18] sm:$0xff]  ;;  %v390_v31 = vld [vmem:[#allocation3 + $0x128] sm:$0xff] }
  0x8e   : > { %536 = vmatpush2.msra.mxu0 %v469_v44  ;;  %899 = vmatpush1.msra.mxu1 %v824_v32  ;;  %v816_v44 = vld [vmem:[%s2305_s10 + $0x10] sm:$0xff]  ;;  %v385_v25 = vld [vmem:[#allocation3 + $0x100] sm:$0xff] }
  0x8f   : > { %537 = vmatprep.subr.mxu0 %v468_v45  ;;  %900 = vmatprep.subr.mxu1 %v823_v33  ;;  %v815_v45 = vld [vmem:[%s2305_s10 + $0x8] sm:$0xff]  ;;  %v853_v27 = vld [vmem:[%s2305_s10 + $0x138] sm:$0xff]  ;;  %v850_v32 = vld [vmem:[%s2305_s10 + $0x120] sm:$0xff] }
  0x90   : > { %538 = vmatpush2.msra.mxu0 %v467_v46  ;;  %901 = vmatpush1.msra.mxu1 %v822_v35  ;;  %v367_v46 = vld [vmem:[#allocation3 + $0x70] sm:$0xff]  ;;  %v849_v33 = vld [vmem:[%s2305_s10 + $0x118] sm:$0xff] }
  0x91   : > { %539 = vmatprep.subr.mxu0 %v466_v47  ;;  %902 = vmatprep.subr.mxu1 %v821_v37  ;;  %v814_v47 = vld [vmem:[%s2305_s10] sm:$0xff]  ;;  %v392_v37 = vld [vmem:[#allocation3 + $0x138] sm:$0xff] }
  0x92   : > { %540 = vmatpush2.msra.mxu0 %v465_v48  ;;  %903 = vmatpush1.msra.mxu1 %v820_v38  ;;  %v370_v48 = vld [vmem:[#allocation3 + $0x88] sm:$0xff]  ;;  %v389_v35 = vld [vmem:[#allocation3 + $0x120] sm:$0xff] }
  0x93   : > { %541 = vmatprep.subr.mxu0 %v464_v49  ;;  %904 = vmatprep.subr.mxu1 %v819_v39  ;;  %v877_v49 = vld [vmem:[%s2305_s10 + $0x1f8] sm:$0xff]  ;;  %v846_v38 = vld [vmem:[%s2305_s10 + $0x100] sm:$0xff]  ;;  %v391_v39 = vld [vmem:[#allocation3 + $0x130] sm:$0xff] }
  0x94   : > { %542 = vmatpush2.msra.mxu0 %v463_v50  ;;  %905 = vmatpush1.msra.mxu1 %v818_v41  ;;  %v876_v50 = vld [vmem:[%s2305_s10 + $0x1f0] sm:$0xff]  ;;  %v393_v41 = vld [vmem:[#allocation3 + $0x140] sm:$0xff] }
  0x95   : > { %543 = vmatprep.subr.mxu0 %v462_v51  ;;  %906 = vmatprep.subr.mxu1 %v817_v43  ;;  %v875_v51 = vld [vmem:[%s2305_s10 + $0x1e8] sm:$0xff] }
  0x96   : > { %544 = vmatpush2.msra.mxu0 %v461_v52  ;;  %907 = vmatpush1.msra.mxu1 %v816_v44  ;;  %v369_v52 = vld [vmem:[#allocation3 + $0x80] sm:$0xff]  ;;  %v395_v43 = vld [vmem:[#allocation3 + $0x150] sm:$0xff]  ;;  %v398_v44 = vld [vmem:[#allocation3 + $0x168] sm:$0xff] }
  0x97   : > { %545 = vmatprep.subr.mxu0 %v460_v53  ;;  %908 = vmatprep.subr.mxu1 %v815_v45  ;;  %v874_v53 = vld [vmem:[%s2305_s10 + $0x1e0] sm:$0xff] }
  0x98   : > { %546 = vmatpush2.msra.mxu0 %v459_v54  ;;  %909 = vmatpush1.msra.mxu1 %v814_v47  ;;  %v372_v54 = vld [vmem:[#allocation3 + $0x98] sm:$0xff]  ;;  %v397_v45 = vld [vmem:[#allocation3 + $0x160] sm:$0xff]  ;;  %v399_v47 = vld [vmem:[#allocation3 + $0x170] sm:$0xff] }
  0x99   : > { %547 = vmatprep.subr.mxu0 %v458_v55  ;;  %910 = vmatprep.subr.mxu1 %v877_v49  ;;  %v873_v55 = vld [vmem:[%s2305_s10 + $0x1d8] sm:$0xff] }
  0x9a   : > { %548 = vmatpush2.msra.mxu0 %v457_v56  ;;  %911 = vmatpush2.msra.mxu1 %v876_v50  ;;  %v872_v56 = vld [vmem:[%s2305_s10 + $0x1d0] sm:$0xff]  ;;  %v401_v49 = vld [vmem:[#allocation3 + $0x180] sm:$0xff] }
  0x9b   : > { %549 = vmatprep.subr.mxu0 %v456_v57  ;;  %912 = vmatprep.subr.mxu1 %v875_v51  ;;  %v871_v57 = vld [vmem:[%s2305_s10 + $0x1c8] sm:$0xff]  ;;  %v404_v50 = vld [vmem:[#allocation3 + $0x198] sm:$0xff] }
  0x9c   : > { %550 = vmatpush2.msra.mxu0 %v455_v58  ;;  %913 = vmatpush2.msra.mxu1 %v874_v53  ;;  %v371_v58 = vld [vmem:[#allocation3 + $0x90] sm:$0xff]  ;;  %v405_v53 = vld [vmem:[#allocation3 + $0x1a0] sm:$0xff] }
  0x9d   : > { %551 = vmatprep.subr.mxu0 %v454_v59  ;;  %914 = vmatprep.subr.mxu1 %v873_v55  ;;  %v870_v59 = vld [vmem:[%s2305_s10 + $0x1c0] sm:$0xff]  ;;  %v403_v51 = vld [vmem:[#allocation3 + $0x190] sm:$0xff] }
  0x9e   : > { %552 = vmatpush2.msra.mxu0 %v453_v60  ;;  %v374_v60 = vld [vmem:[#allocation3 + $0xa8] sm:$0xff]  ;;  %915 = vmatpush2.msra.mxu1 %v872_v56  ;;  %v407_v55 = vld [vmem:[#allocation3 + $0x1b0] sm:$0xff] }
  0x9f   : > { %553 = vmatprep.subr.mxu0 %v452_v61  ;;  %v869_v61 = vld [vmem:[%s2305_s10 + $0x1b8] sm:$0xff]  ;;  %916 = vmatprep.subr.mxu1 %v871_v57  ;;  %v410_v56 = vld [vmem:[#allocation3 + $0x1c8] sm:$0xff] }
  0xa0   : > { %554 = vmatpush2.msra.mxu0 %v451_v62  ;;  %v868_v62 = vld [vmem:[%s2305_s10 + $0x1b0] sm:$0xff]  ;;  %917 = vmatpush2.msra.mxu1 %v870_v59  ;;  %v409_v57 = vld [vmem:[#allocation3 + $0x1c0] sm:$0xff] }
  0xa1   : > { %555 = vmatprep.subr.mxu0 %v450_v63  ;;  %v867_v63 = vld [vmem:[%s2305_s10 + $0x1a8] sm:$0xff]  ;;  %918 = vmatprep.subr.mxu1 %v869_v61  ;;  %v413_v61 = vld [vmem:[#allocation3 + $0x1e0] sm:$0xff] }
  0xa2   : > { %556 = vmatpush2.msra.mxu0 %v449_v0  ;;  %v373_v0 = vld [vmem:[#allocation3 + $0xa0] sm:$0xff]  ;;  %919 = vmatpush2.msra.mxu1 %v868_v62  ;;  %v411_v59 = vld [vmem:[#allocation3 + $0x1d0] sm:$0xff]  ;;  %v416_v62 = vld [vmem:[#allocation3 + $0x1f8] sm:$0xff] }
  0xa3   : > { %558 = vmatmul.mubr.f32.vlgmr.msra.gmra.mxu0 %v353_v4  ;;  %920 = vmatprep.subr.mxu1 %v867_v63  ;;  %v864_v4 = vld [vmem:[%s2305_s10 + $0x190] sm:$0xff] }
  0xa4   : > { %563 = vmatprep.mubr.f32.mxu0 %v356_v6  ;;  %921 = vmatpush2.msra.mxu1 %v866_v1  ;;  %v375_v6 = vld [vmem:[#allocation3 + $0xb0] sm:$0xff] }
  0xa5   : > { %922 = vmatprep.subr.mxu1 %v865_v3  ;;  %v415_v63 = vld [vmem:[#allocation3 + $0x1f0] sm:$0xff]  ;;  %v481_v3 = vld [vmem:[%s2303_s11] sm:$0x3] }
  0xa6   : > { %923 = vmatpush2.msra.mxu1 %v864_v4 }
  0xa7   : > { %564 = vmatmul.mubr.f32.gmra.mxu0 %v355_v10  ;;  %924 = vmatprep.subr.mxu1 %v863_v5  ;;  %v860_v10 = vld [vmem:[%s2305_s10 + $0x170] sm:$0xff] }
  0xa8   : > { %569 = vmatprep.mubr.f32.mxu0 %v358_v12  ;;  %925 = vmatpush2.msra.mxu1 %v862_v7  ;;  %v377_v12 = vld [vmem:[#allocation3 + $0xc0] sm:$0xff] }
  0xa9   : > { %926 = vmatprep.subr.mxu1 %v861_v9 }
  0xaa   : > { %927 = vmatpush2.msra.mxu1 %v860_v10 }
  0xab   : > { %570 = vmatmul.mubr.f32.gmra.mxu0 %v357_v16  ;;  %928 = vmatprep.subr.mxu1 %v859_v11  ;;  %v856_v16 = vld [vmem:[%s2305_s10 + $0x150] sm:$0xff] }
  0xac   : > { %575 = vmatprep.mubr.f32.mxu0 %v360_v18  ;;  %929 = vmatpush2.msra.mxu1 %v858_v13  ;;  %v379_v18 = vld [vmem:[#allocation3 + $0xd0] sm:$0xff] }
  0xad   : > { %930 = vmatprep.subr.mxu1 %v857_v15 }
  0xae   : > { %931 = vmatpush2.msra.mxu1 %v856_v16 }
  0xaf   : > { %576 = vmatmul.mubr.f32.gmra.mxu0 %v359_v22  ;;  %932 = vmatprep.subr.mxu1 %v855_v17  ;;  %v384_v22 = vld [vmem:[#allocation3 + $0xf8] sm:$0xff] }
  0xb0   : > { %581 = vmatprep.mubr.f32.mxu0 %v362_v24  ;;  %933 = vmatpush2.msra.mxu1 %v854_v19  ;;  %v386_v24 = vld [vmem:[#allocation3 + $0x108] sm:$0xff] }
  0xb1   : > { %934 = vmatprep.subr.mxu1 %v853_v27 }
  0xb3   : > { %582 = vmatmul.mubr.f32.gmra.mxu0 %v361_v28  ;;  %v852_v28 = vld [vmem:[%s2305_s10 + $0x130] sm:$0xff] }
  0xb4   : > { %587 = vmatprep.mubr.f32.mxu0 %v364_v30  ;;  %935 = vmatpush2.msra.mxu1 %v852_v28  ;;  %v851_v30 = vld [vmem:[%s2305_s10 + $0x128] sm:$0xff] }
  0xb5   : > { %936 = vmatprep.subr.mxu1 %v851_v30 }
  0xb6   : > { %937 = vmatpush2.msra.mxu1 %v850_v32 }
  0xb7   : > { %588 = vmatmul.mubr.f32.gmra.mxu0 %v363_v34  ;;  %938 = vmatprep.subr.mxu1 %v849_v33  ;;  %v848_v34 = vld [vmem:[%s2305_s10 + $0x110] sm:$0xff] }
  0xb8   : > { %593 = vmatprep.mubr.f32.mxu0 %v366_v36  ;;  %939 = vmatpush2.msra.mxu1 %v848_v34  ;;  %v847_v36 = vld [vmem:[%s2305_s10 + $0x108] sm:$0xff] }
  0xb9   : > { %940 = vmatprep.subr.mxu1 %v847_v36 }
  0xba   : > { %941 = vmatpush2.msra.mxu1 %v846_v38 }
  0xbb   : > { %594 = vmatmul.mubr.f32.gmra.mxu0 %v365_v40  ;;  %v394_v40 = vld [vmem:[#allocation3 + $0x148] sm:$0xff] }
  0xbc   : > { %599 = vmatprep.mubr.f32.mxu0 %v368_v42  ;;  %v396_v42 = vld [vmem:[#allocation3 + $0x158] sm:$0xff] }
  0xbf   : > { %600 = vmatmul.mubr.f32.gmra.mxu0 %v367_v46  ;;  %v400_v46 = vld [vmem:[#allocation3 + $0x178] sm:$0xff] }
  0xc0   : > { %605 = vmatprep.mubr.f32.mxu0 %v370_v48  ;;  %v402_v48 = vld [vmem:[#allocation3 + $0x188] sm:$0xff] }
  0xc3   : > { %606 = vmatmul.mubr.f32.gmra.mxu0 %v369_v52  ;;  %v406_v52 = vld [vmem:[#allocation3 + $0x1a8] sm:$0xff] }
  0xc4   : > { %611 = vmatprep.mubr.f32.mxu0 %v372_v54  ;;  %v408_v54 = vld [vmem:[#allocation3 + $0x1b8] sm:$0xff] }
  0xc7   : > { %612 = vmatmul.mubr.f32.gmra.mxu0 %v371_v58  ;;  %v412_v58 = vld [vmem:[#allocation3 + $0x1d8] sm:$0xff] }
  0xc8   : > { %617 = vmatprep.mubr.f32.mxu0 %v374_v60  ;;  %v414_v60 = vld [vmem:[#allocation3 + $0x1e8] sm:$0xff] }
  0xcb   : > { %618 = vmatmul.mubr.f32.gmra.mxu0 %v373_v0  ;;  %v483_v0 = vlaneseq }
  0xcc   : > { %623 = vmatprep.mubr.f32.mxu0 %v376_v2 }
  0xcd   : > { %v2439_v1 = vshrl.u32 %v483_v0, 7 }
  0xcf   : > { %624 = vmatmul.mubr.f32.gmra.mxu0 %v375_v6  ;;  %3005 = vst [vmem:[#allocation16_spill] sm:$0xff] %v2439_v1  ;;  %v2964_v2 = vsub.s32 0, %v2439_v1  ;;  %v2963_v4 = vsub.s32 1, %v2439_v1 }
  0xd0   : > { %629 = vmatprep.mubr.f32.mxu0 %v378_v8 }
  0xd1   : > { %v2446_v5 = vrot.slane %v481_v3, %v2964_v2  ;;  %v2450_v6 = vrot.slane %v481_v3, %v2963_v4 }
  0xd3   : > { %630 = vmatmul.mubr.f32.gmra.mxu0 %v377_v12 }
  0xd4   : > { %635 = vmatprep.mubr.f32.mxu0 %v380_v14 }
  0xd7   : > { %636 = vmatmul.mubr.f32.gmra.mxu0 %v379_v18 }
  0xd8   : > { %641 = vmatprep.mubr.f32.mxu0 %v382_v20 }
  0xdb   : > { %642 = vmatmul.mubr.f32.gmra.mxu0 %v381_v21 }
  0xdc   : > { %647 = vmatprep.mubr.f32.mxu0 %v384_v22 }
  0xdf   : > { %648 = vmatmul.mubr.f32.gmra.mxu0 %v383_v23 }
  0xe0   : > { %653 = vmatprep.mubr.f32.mxu0 %v386_v24 }
  0xe3   : > { %654 = vmatmul.mubr.f32.gmra.mxu0 %v385_v25 }
  0xe4   : > { %659 = vmatprep.mubr.f32.mxu0 %v388_v26 }
  0xe7   : > { %660 = vmatmul.mubr.f32.gmra.mxu0 %v387_v29 }
  0xe8   : > { %665 = vmatprep.mubr.f32.mxu0 %v390_v31 }
  0xeb   : > { %666 = vmatmul.mubr.f32.gmra.mxu0 %v389_v35 }
  0xec   : > { %671 = vmatprep.mubr.f32.mxu0 %v392_v37 }
  0xef   : > { %672 = vmatmul.mubr.f32.gmra.mxu0 %v391_v39 }
  0xf0   : > { %677 = vmatprep.mubr.f32.mxu0 %v394_v40 }
  0xf3   : > { %678 = vmatmul.mubr.f32.gmra.mxu0 %v393_v41 }
  0xf4   : > { %683 = vmatprep.mubr.f32.mxu0 %v396_v42 }
  0xf7   : > { %684 = vmatmul.mubr.f32.gmra.mxu0 %v395_v43 }
  0xf8   : > { %689 = vmatprep.mubr.f32.mxu0 %v398_v44 }
  0xfb   : > { %690 = vmatmul.mubr.f32.gmra.mxu0 %v397_v45 }
  0xfc   : > { %695 = vmatprep.mubr.f32.mxu0 %v400_v46 }
  0xff   : > { %696 = vmatmul.mubr.f32.gmra.mxu0 %v399_v47 }
 0x100   : > { %701 = vmatprep.mubr.f32.mxu0 %v402_v48 }
 0x103   : > { %702 = vmatmul.mubr.f32.gmra.mxu0 %v401_v49 }
 0x104   : > { %707 = vmatprep.mubr.f32.mxu0 %v404_v50 }
 0x107   : > { %708 = vmatmul.mubr.f32.gmra.mxu0 %v403_v51 }
 0x108   : > { %713 = vmatprep.mubr.f32.mxu0 %v406_v52 }
 0x10b   : > { %714 = vmatmul.mubr.f32.gmra.mxu0 %v405_v53 }
 0x10c   : > { %719 = vmatprep.mubr.f32.mxu0 %v408_v54 }
 0x10f   : > { %720 = vmatmul.mubr.f32.gmra.mxu0 %v407_v55 }
 0x110   : > { %725 = vmatprep.mubr.f32.mxu0 %v410_v56 }
 0x113   : > { %726 = vmatmul.mubr.f32.gmra.mxu0 %v409_v57 }
 0x114   : > { %731 = vmatprep.mubr.f32.mxu0 %v412_v58 }
 0x117   : > { %732 = vmatmul.mubr.f32.gmra.mxu0 %v411_v59 }
 0x118   : > { %737 = vmatprep.mubr.f32.mxu0 %v414_v60 }
 0x11b   : > { %738 = vmatmul.mubr.f32.gmra.mxu0 %v413_v61 }
 0x11c   : > { %743 = vmatprep.mubr.f32.mxu0 %v416_v62 }
 0x11f   : > { %744 = vmatmul.mubr.f32.gmra.mxu0 %v415_v63 }
 0x163   : > { %v559_v7 = vpop.f32.mrf.mxu0 }
 0x164   : > { %v560_v8 = vadd.f32 %v559_v7, %v2446_v5 }
 0x165   : > { %v561_v9 = vpop.f32.mrf.mxu0 }
 0x166   : > { %v562_v10 = vadd.f32 %v561_v9, %v2450_v6  ;;  %v750_v13 = vmax.f32 %v560_v8, 0.0 }
 0x167   : > { %v565_v11 = vpop.f32.mrf.mxu0 }
 0x168   : > { %v751_v12 = vmax.f32 %v562_v10, 0.0  ;;  %v566_v14 = vadd.f32 %v565_v11, %v2446_v5 }
 0x169   : > { %v567_v15 = vpop.f32.mrf.mxu0 }
 0x16a   : > { %v568_v16 = vadd.f32 %v567_v15, %v2450_v6  ;;  %942 = vmatprep.mubr.f32.mxu1 %v751_v12  ;;  %v752_v19 = vmax.f32 %v566_v14, 0.0 }
 0x16b   : > { %v571_v17 = vpop.f32.mrf.mxu0  ;;  %943 = vmatmul.mubr.f32.vlgmr.msra.gmra.mxu1 %v750_v13 }
 0x16c   : > { %v753_v18 = vmax.f32 %v568_v16, 0.0  ;;  %v572_v20 = vadd.f32 %v571_v17, %v2446_v5 }
 0x16d   : > { %v573_v21 = vpop.f32.mrf.mxu0 }
 0x16e   : > { %v574_v22 = vadd.f32 %v573_v21, %v2450_v6  ;;  %948 = vmatprep.mubr.f32.mxu1 %v753_v18  ;;  %v754_v25 = vmax.f32 %v572_v20, 0.0 }
 0x16f   : > { %v577_v23 = vpop.f32.mrf.mxu0  ;;  %949 = vmatmul.mubr.f32.gmra.mxu1 %v752_v19 }
 0x170   : > { %v755_v24 = vmax.f32 %v574_v22, 0.0  ;;  %v578_v26 = vadd.f32 %v577_v23, %v2446_v5 }
 0x171   : > { %v579_v27 = vpop.f32.mrf.mxu0 }
 0x172   : > { %v580_v28 = vadd.f32 %v579_v27, %v2450_v6  ;;  %954 = vmatprep.mubr.f32.mxu1 %v755_v24  ;;  %v756_v31 = vmax.f32 %v578_v26, 0.0 }
 0x173   : > { %v583_v29 = vpop.f32.mrf.mxu0  ;;  %955 = vmatmul.mubr.f32.gmra.mxu1 %v754_v25 }
 0x174   : > { %v757_v30 = vmax.f32 %v580_v28, 0.0  ;;  %v584_v32 = vadd.f32 %v583_v29, %v2446_v5 }
 0x175   : > { %v585_v33 = vpop.f32.mrf.mxu0 }
 0x176   : > { %v586_v34 = vadd.f32 %v585_v33, %v2450_v6  ;;  %960 = vmatprep.mubr.f32.mxu1 %v757_v30  ;;  %v758_v37 = vmax.f32 %v584_v32, 0.0 }
 0x177   : > { %v589_v35 = vpop.f32.mrf.mxu0  ;;  %961 = vmatmul.mubr.f32.gmra.mxu1 %v756_v31 }
 0x178   : > { %v759_v36 = vmax.f32 %v586_v34, 0.0  ;;  %v590_v38 = vadd.f32 %v589_v35, %v2446_v5 }
 0x179   : > { %v591_v39 = vpop.f32.mrf.mxu0 }
 0x17a   : > { %v592_v40 = vadd.f32 %v591_v39, %v2450_v6  ;;  %966 = vmatprep.mubr.f32.mxu1 %v759_v36  ;;  %v760_v43 = vmax.f32 %v590_v38, 0.0 }
 0x17b   : > { %v595_v41 = vpop.f32.mrf.mxu0  ;;  %967 = vmatmul.mubr.f32.gmra.mxu1 %v758_v37 }
 0x17c   : > { %v761_v42 = vmax.f32 %v592_v40, 0.0  ;;  %v596_v44 = vadd.f32 %v595_v41, %v2446_v5 }
 0x17d   : > { %v597_v45 = vpop.f32.mrf.mxu0 }
 0x17e   : > { %v598_v46 = vadd.f32 %v597_v45, %v2450_v6  ;;  %972 = vmatprep.mubr.f32.mxu1 %v761_v42  ;;  %v762_v49 = vmax.f32 %v596_v44, 0.0 }
 0x17f   : > { %v601_v47 = vpop.f32.mrf.mxu0  ;;  %973 = vmatmul.mubr.f32.gmra.mxu1 %v760_v43 }
 0x180   : > { %v763_v48 = vmax.f32 %v598_v46, 0.0  ;;  %v602_v50 = vadd.f32 %v601_v47, %v2446_v5 }
 0x181   : > { %v603_v51 = vpop.f32.mrf.mxu0 }
 0x182   : > { %v604_v52 = vadd.f32 %v603_v51, %v2450_v6  ;;  %978 = vmatprep.mubr.f32.mxu1 %v763_v48  ;;  %v764_v55 = vmax.f32 %v602_v50, 0.0 }
 0x183   : > { %v607_v53 = vpop.f32.mrf.mxu0  ;;  %979 = vmatmul.mubr.f32.gmra.mxu1 %v762_v49 }
 0x184   : > { %v765_v54 = vmax.f32 %v604_v52, 0.0  ;;  %v608_v56 = vadd.f32 %v607_v53, %v2446_v5 }
 0x185   : > { %v609_v57 = vpop.f32.mrf.mxu0 }
 0x186   : > { %v610_v58 = vadd.f32 %v609_v57, %v2450_v6  ;;  %984 = vmatprep.mubr.f32.mxu1 %v765_v54  ;;  %v766_v61 = vmax.f32 %v608_v56, 0.0 }
 0x187   : > { %v613_v59 = vpop.f32.mrf.mxu0  ;;  %985 = vmatmul.mubr.f32.gmra.mxu1 %v764_v55 }
 0x188   : > { %v767_v60 = vmax.f32 %v610_v58, 0.0  ;;  %v614_v62 = vadd.f32 %v613_v59, %v2446_v5 }
 0x189   : > { %v615_v63 = vpop.f32.mrf.mxu0 }
 0x18a   : > { %v616_v0 = vadd.f32 %v615_v63, %v2450_v6  ;;  %990 = vmatprep.mubr.f32.mxu1 %v767_v60  ;;  %v768_v8 = vmax.f32 %v614_v62, 0.0 }
 0x18b   : > { %v619_v3 = vpop.f32.mrf.mxu0  ;;  %991 = vmatmul.mubr.f32.gmra.mxu1 %v766_v61 }
 0x18c   : > { %v769_v7 = vmax.f32 %v616_v0, 0.0  ;;  %v620_v9 = vadd.f32 %v619_v3, %v2446_v5 }
 0x18d   : > { %v621_v10 = vpop.f32.mrf.mxu0 }
 0x18e   : > { %v622_v11 = vadd.f32 %v621_v10, %v2450_v6  ;;  %996 = vmatprep.mubr.f32.mxu1 %v769_v7  ;;  %v770_v14 = vmax.f32 %v620_v9, 0.0 }
 0x18f   : > { %v625_v12 = vpop.f32.mrf.mxu0  ;;  %997 = vmatmul.mubr.f32.gmra.mxu1 %v768_v8 }
 0x190   : > { %v771_v13 = vmax.f32 %v622_v11, 0.0  ;;  %v626_v15 = vadd.f32 %v625_v12, %v2446_v5 }
 0x191   : > { %v627_v16 = vpop.f32.mrf.mxu0 }
 0x192   : > { %v628_v17 = vadd.f32 %v627_v16, %v2450_v6  ;;  %1002 = vmatprep.mubr.f32.mxu1 %v771_v13  ;;  %v772_v20 = vmax.f32 %v626_v15, 0.0 }
 0x193   : > { %v631_v18 = vpop.f32.mrf.mxu0  ;;  %1003 = vmatmul.mubr.f32.gmra.mxu1 %v770_v14 }
 0x194   : > { %v773_v19 = vmax.f32 %v628_v17, 0.0  ;;  %v632_v21 = vadd.f32 %v631_v18, %v2446_v5 }
 0x195   : > { %v633_v22 = vpop.f32.mrf.mxu0 }
 0x196   : > { %v634_v23 = vadd.f32 %v633_v22, %v2450_v6  ;;  %1008 = vmatprep.mubr.f32.mxu1 %v773_v19  ;;  %v774_v26 = vmax.f32 %v632_v21, 0.0 }
 0x197   : > { %v637_v24 = vpop.f32.mrf.mxu0  ;;  %1009 = vmatmul.mubr.f32.gmra.mxu1 %v772_v20 }
 0x198   : > { %v775_v25 = vmax.f32 %v634_v23, 0.0  ;;  %v638_v27 = vadd.f32 %v637_v24, %v2446_v5 }
 0x199   : > { %v639_v28 = vpop.f32.mrf.mxu0 }
 0x19a   : > { %v640_v29 = vadd.f32 %v639_v28, %v2450_v6  ;;  %1014 = vmatprep.mubr.f32.mxu1 %v775_v25  ;;  %v776_v32 = vmax.f32 %v638_v27, 0.0 }
 0x19b   : > { %v643_v30 = vpop.f32.mrf.mxu0  ;;  %1015 = vmatmul.mubr.f32.gmra.mxu1 %v774_v26 }
 0x19c   : > { %v777_v31 = vmax.f32 %v640_v29, 0.0  ;;  %v644_v33 = vadd.f32 %v643_v30, %v2446_v5 }
 0x19d   : > { %v645_v34 = vpop.f32.mrf.mxu0 }
 0x19e   : > { %v646_v35 = vadd.f32 %v645_v34, %v2450_v6  ;;  %1020 = vmatprep.mubr.f32.mxu1 %v777_v31  ;;  %v778_v38 = vmax.f32 %v644_v33, 0.0 }
 0x19f   : > { %v649_v36 = vpop.f32.mrf.mxu0  ;;  %1021 = vmatmul.mubr.f32.gmra.mxu1 %v776_v32 }
 0x1a0   : > { %v779_v37 = vmax.f32 %v646_v35, 0.0  ;;  %v650_v39 = vadd.f32 %v649_v36, %v2446_v5 }
 0x1a1   : > { %v651_v40 = vpop.f32.mrf.mxu0 }
 0x1a2   : > { %v652_v41 = vadd.f32 %v651_v40, %v2450_v6  ;;  %1026 = vmatprep.mubr.f32.mxu1 %v779_v37  ;;  %v780_v44 = vmax.f32 %v650_v39, 0.0 }
 0x1a3   : > { %v655_v42 = vpop.f32.mrf.mxu0  ;;  %1027 = vmatmul.mubr.f32.gmra.mxu1 %v778_v38 }
 0x1a4   : > { %v781_v43 = vmax.f32 %v652_v41, 0.0  ;;  %v656_v45 = vadd.f32 %v655_v42, %v2446_v5 }
 0x1a5   : > { %v657_v46 = vpop.f32.mrf.mxu0 }
 0x1a6   : > { %v658_v47 = vadd.f32 %v657_v46, %v2450_v6  ;;  %1032 = vmatprep.mubr.f32.mxu1 %v781_v43  ;;  %v782_v50 = vmax.f32 %v656_v45, 0.0 }
 0x1a7   : > { %v661_v48 = vpop.f32.mrf.mxu0  ;;  %1033 = vmatmul.mubr.f32.gmra.mxu1 %v780_v44 }
 0x1a8   : > { %v783_v49 = vmax.f32 %v658_v47, 0.0  ;;  %v662_v51 = vadd.f32 %v661_v48, %v2446_v5 }
 0x1a9   : > { %v663_v52 = vpop.f32.mrf.mxu0 }
 0x1aa   : > { %v664_v53 = vadd.f32 %v663_v52, %v2450_v6  ;;  %1038 = vmatprep.mubr.f32.mxu1 %v783_v49  ;;  %v784_v56 = vmax.f32 %v662_v51, 0.0 }
 0x1ab   : > { %v667_v54 = vpop.f32.mrf.mxu0  ;;  %1039 = vmatmul.mubr.f32.gmra.mxu1 %v782_v50 }
 0x1ac   : > { %v785_v55 = vmax.f32 %v664_v53, 0.0  ;;  %v668_v57 = vadd.f32 %v667_v54, %v2446_v5 }
 0x1ad   : > { %v669_v58 = vpop.f32.mrf.mxu0 }
 0x1ae   : > { %v670_v59 = vadd.f32 %v669_v58, %v2450_v6  ;;  %1044 = vmatprep.mubr.f32.mxu1 %v785_v55  ;;  %v786_v62 = vmax.f32 %v668_v57, 0.0 }
 0x1af   : > { %v673_v60 = vpop.f32.mrf.mxu0  ;;  %1045 = vmatmul.mubr.f32.gmra.mxu1 %v784_v56 }
 0x1b0   : > { %v787_v61 = vmax.f32 %v670_v59, 0.0  ;;  %v674_v63 = vadd.f32 %v673_v60, %v2446_v5 }
 0x1b1   : > { %v675_v0 = vpop.f32.mrf.mxu0 }
 0x1b2   : > { %v676_v3 = vadd.f32 %v675_v0, %v2450_v6  ;;  %1050 = vmatprep.mubr.f32.mxu1 %v787_v61  ;;  %v788_v9 = vmax.f32 %v674_v63, 0.0 }
 0x1b3   : > { %v679_v7 = vpop.f32.mrf.mxu0  ;;  %1051 = vmatmul.mubr.f32.gmra.mxu1 %v786_v62 }
 0x1b4   : > { %v789_v8 = vmax.f32 %v676_v3, 0.0  ;;  %v680_v10 = vadd.f32 %v679_v7, %v2446_v5 }
 0x1b5   : > { %v681_v11 = vpop.f32.mrf.mxu0 }
 0x1b6   : > { %v682_v12 = vadd.f32 %v681_v11, %v2450_v6  ;;  %1056 = vmatprep.mubr.f32.mxu1 %v789_v8  ;;  %v790_v15 = vmax.f32 %v680_v10, 0.0 }
 0x1b7   : > { %v685_v13 = vpop.f32.mrf.mxu0  ;;  %1057 = vmatmul.mubr.f32.gmra.mxu1 %v788_v9 }
 0x1b8   : > { %v791_v14 = vmax.f32 %v682_v12, 0.0  ;;  %v686_v16 = vadd.f32 %v685_v13, %v2446_v5 }
 0x1b9   : > { %v687_v17 = vpop.f32.mrf.mxu0 }
 0x1ba   : > { %v688_v18 = vadd.f32 %v687_v17, %v2450_v6  ;;  %1062 = vmatprep.mubr.f32.mxu1 %v791_v14  ;;  %v792_v21 = vmax.f32 %v686_v16, 0.0 }
 0x1bb   : > { %v691_v19 = vpop.f32.mrf.mxu0  ;;  %1063 = vmatmul.mubr.f32.gmra.mxu1 %v790_v15 }
 0x1bc   : > { %v793_v20 = vmax.f32 %v688_v18, 0.0  ;;  %v692_v22 = vadd.f32 %v691_v19, %v2446_v5 }
 0x1bd   : > { %v693_v23 = vpop.f32.mrf.mxu0 }
 0x1be   : > { %v694_v24 = vadd.f32 %v693_v23, %v2450_v6  ;;  %1068 = vmatprep.mubr.f32.mxu1 %v793_v20  ;;  %v794_v27 = vmax.f32 %v692_v22, 0.0 }
 0x1bf   : > { %v697_v25 = vpop.f32.mrf.mxu0  ;;  %1069 = vmatmul.mubr.f32.gmra.mxu1 %v792_v21 }
 0x1c0   : > { %v795_v26 = vmax.f32 %v694_v24, 0.0  ;;  %v698_v28 = vadd.f32 %v697_v25, %v2446_v5 }
 0x1c1   : > { %v699_v29 = vpop.f32.mrf.mxu0 }
 0x1c2   : > { %v700_v30 = vadd.f32 %v699_v29, %v2450_v6  ;;  %1074 = vmatprep.mubr.f32.mxu1 %v795_v26  ;;  %v796_v33 = vmax.f32 %v698_v28, 0.0 }
 0x1c3   : > { %v703_v31 = vpop.f32.mrf.mxu0  ;;  %1075 = vmatmul.mubr.f32.gmra.mxu1 %v794_v27 }
 0x1c4   : > { %v797_v32 = vmax.f32 %v700_v30, 0.0  ;;  %v704_v34 = vadd.f32 %v703_v31, %v2446_v5 }
 0x1c5   : > { %v705_v35 = vpop.f32.mrf.mxu0 }
 0x1c6   : > { %v706_v36 = vadd.f32 %v705_v35, %v2450_v6  ;;  %1080 = vmatprep.mubr.f32.mxu1 %v797_v32  ;;  %v798_v39 = vmax.f32 %v704_v34, 0.0 }
 0x1c7   : > { %v709_v37 = vpop.f32.mrf.mxu0  ;;  %1081 = vmatmul.mubr.f32.gmra.mxu1 %v796_v33 }
 0x1c8   : > { %v799_v38 = vmax.f32 %v706_v36, 0.0  ;;  %v710_v40 = vadd.f32 %v709_v37, %v2446_v5 }
 0x1c9   : > { %v711_v41 = vpop.f32.mrf.mxu0 }
 0x1ca   : > { %v712_v42 = vadd.f32 %v711_v41, %v2450_v6  ;;  %1086 = vmatprep.mubr.f32.mxu1 %v799_v38  ;;  %v800_v45 = vmax.f32 %v710_v40, 0.0 }
 0x1cb   : > { %v715_v43 = vpop.f32.mrf.mxu0  ;;  %1087 = vmatmul.mubr.f32.gmra.mxu1 %v798_v39 }
 0x1cc   : > { %v801_v44 = vmax.f32 %v712_v42, 0.0  ;;  %v716_v46 = vadd.f32 %v715_v43, %v2446_v5 }
 0x1cd   : > { %v717_v47 = vpop.f32.mrf.mxu0 }
 0x1ce   : > { %v718_v48 = vadd.f32 %v717_v47, %v2450_v6  ;;  %1092 = vmatprep.mubr.f32.mxu1 %v801_v44  ;;  %v802_v51 = vmax.f32 %v716_v46, 0.0 }
 0x1cf   : > { %v721_v49 = vpop.f32.mrf.mxu0  ;;  %1093 = vmatmul.mubr.f32.gmra.mxu1 %v800_v45 }
 0x1d0   : > { %v803_v50 = vmax.f32 %v718_v48, 0.0  ;;  %v722_v52 = vadd.f32 %v721_v49, %v2446_v5 }
 0x1d1   : > { %v723_v53 = vpop.f32.mrf.mxu0 }
 0x1d2   : > { %v724_v54 = vadd.f32 %v723_v53, %v2450_v6  ;;  %1098 = vmatprep.mubr.f32.mxu1 %v803_v50  ;;  %v804_v57 = vmax.f32 %v722_v52, 0.0 }
 0x1d3   : > { %v727_v55 = vpop.f32.mrf.mxu0  ;;  %1099 = vmatmul.mubr.f32.gmra.mxu1 %v802_v51 }
 0x1d4   : > { %v805_v56 = vmax.f32 %v724_v54, 0.0  ;;  %v728_v58 = vadd.f32 %v727_v55, %v2446_v5 }
 0x1d5   : > { %v729_v59 = vpop.f32.mrf.mxu0 }
 0x1d6   : > { %v730_v60 = vadd.f32 %v729_v59, %v2450_v6  ;;  %1104 = vmatprep.mubr.f32.mxu1 %v805_v56  ;;  %v806_v63 = vmax.f32 %v728_v58, 0.0 }
 0x1d7   : > { %v733_v61 = vpop.f32.mrf.mxu0  ;;  %1105 = vmatmul.mubr.f32.gmra.mxu1 %v804_v57 }
 0x1d8   : > { %v807_v62 = vmax.f32 %v730_v60, 0.0  ;;  %v734_v0 = vadd.f32 %v733_v61, %v2446_v5 }
 0x1d9   : > { %v735_v3 = vpop.f32.mrf.mxu0 }
 0x1da   : > { %v736_v7 = vadd.f32 %v735_v3, %v2450_v6  ;;  %1110 = vmatprep.mubr.f32.mxu1 %v807_v62  ;;  %v808_v10 = vmax.f32 %v734_v0, 0.0 }
 0x1db   : > { %v739_v8 = vpop.f32.mrf.mxu0  ;;  %1111 = vmatmul.mubr.f32.gmra.mxu1 %v806_v63 }
 0x1dc   : > { %v809_v9 = vmax.f32 %v736_v7, 0.0  ;;  %v740_v11 = vadd.f32 %v739_v8, %v2446_v5 }
 0x1dd   : > { %v741_v12 = vpop.f32.mrf.mxu0 }
 0x1de   : > { %v742_v13 = vadd.f32 %v741_v12, %v2450_v6  ;;  %1116 = vmatprep.mubr.f32.mxu1 %v809_v9  ;;  %v810_v16 = vmax.f32 %v740_v11, 0.0 }
 0x1df   : > { %v745_v14 = vpop.f32.mrf.mxu0  ;;  %1117 = vmatmul.mubr.f32.gmra.mxu1 %v808_v10 }
 0x1e0   : > { %v811_v15 = vmax.f32 %v742_v13, 0.0  ;;  %v746_v17 = vadd.f32 %v745_v14, %v2446_v5 }
 0x1e1   : > { %v747_v18 = vpop.f32.mrf.mxu0 }
 0x1e2   : > { %v748_v19 = vadd.f32 %v747_v18, %v2450_v6  ;;  %1122 = vmatprep.mubr.f32.mxu1 %v811_v15  ;;  %v812_v21 = vmax.f32 %v746_v17, 0.0 }
 0x1e3   : > { %1123 = vmatmul.mubr.f32.gmra.mxu1 %v810_v16 }
 0x1e4   : > { %v813_v20 = vmax.f32 %v748_v19, 0.0 }
 0x1e6   : > { %1128 = vmatprep.mubr.f32.mxu1 %v813_v20 }
 0x1e7   : > { %1129 = vmatmul.mubr.f32.gmra.mxu1 %v812_v21 }
 0x22b   : > { %v2516_v22 = vpop.f32.mrf.mxu1 }
 0x22c   : > { %3006 = vst [vmem:[#allocation17_spill] sm:$0xff] %v2516_v22 }
 0x22d   : > { %v2518_v23 = vpop.f32.mrf.mxu1 }
 0x22e   : > { %3007 = vst [vmem:[#allocation18_spill] sm:$0xff] %v2518_v23 }
 0x22f   : > { %v2520_v24 = vpop.f32.mrf.mxu1 }
 0x230   : > { %3008 = vst [vmem:[#allocation19_spill] sm:$0xff] %v2520_v24 }
 0x231   : > { %v2522_v25 = vpop.f32.mrf.mxu1 }
 0x233   : > { %v2524_v26 = vpop.f32.mrf.mxu1 }
 0x235   : > { %v2526_v5 = vpop.f32.mrf.mxu1 }
 0x237   : > { %v2528_v27 = vpop.f32.mrf.mxu1 }
 0x239   : > { %v2530_v6 = vpop.f32.mrf.mxu1 }
 0x23b   : > { %v2532_v28 = vpop.f32.mrf.mxu1 }
 0x23d   : > { %v2534_v29 = vpop.f32.mrf.mxu1 }
 0x23f   : > { %v2536_v30 = vpop.f32.mrf.mxu1 }
 0x241   : > { %v2538_v31 = vpop.f32.mrf.mxu1 }
 0x243   : > { %v2540_v32 = vpop.f32.mrf.mxu1 }
 0x245   : > { %v2542_v33 = vpop.f32.mrf.mxu1 }
 0x247   : > { %v2544_v34 = vpop.f32.mrf.mxu1 }
 0x249   : > { %v2546_v35 = vpop.f32.mrf.mxu1 }
 0x24b   : > { %v2548_v36 = vpop.f32.mrf.mxu1 }
 0x24d   : > { %v2550_v37 = vpop.f32.mrf.mxu1 }
 0x24f   : > { %v2552_v38 = vpop.f32.mrf.mxu1 }
 0x251   : > { %v2554_v39 = vpop.f32.mrf.mxu1 }
 0x253   : > { %v2556_v40 = vpop.f32.mrf.mxu1 }
 0x255   : > { %v2558_v41 = vpop.f32.mrf.mxu1 }
 0x257   : > { %v2560_v42 = vpop.f32.mrf.mxu1 }
 0x259   : > { %v2562_v43 = vpop.f32.mrf.mxu1 }
 0x25b   : > { %v2564_v44 = vpop.f32.mrf.mxu1 }
 0x25d   : > { %v2566_v45 = vpop.f32.mrf.mxu1 }
 0x25f   : > { %v2568_v46 = vpop.f32.mrf.mxu1 }
 0x261   : > { %v2570_v47 = vpop.f32.mrf.mxu1 }
 0x263   : > { %v2572_v48 = vpop.f32.mrf.mxu1 }
 0x265   : > { %v2574_v49 = vpop.f32.mrf.mxu1 }
 0x267   : > { %v2576_v50 = vpop.f32.mrf.mxu1 }
 0x269   : > { %v2578_v51 = vpop.f32.mrf.mxu1 }
 0x26b   : > { %v2580_v52 = vpop.f32.mrf.mxu1 }
 0x26d   : > { %v2582_v53 = vpop.f32.mrf.mxu1 }
 0x26f   : > { %v2584_v54 = vpop.f32.mrf.mxu1 }
 0x271   : > { %v2586_v55 = vpop.f32.mrf.mxu1 }
 0x273   : > { %v2588_v56 = vpop.f32.mrf.mxu1 }
 0x275   : > { %v2590_v57 = vpop.f32.mrf.mxu1 }
 0x277   : > { %v2592_v58 = vpop.f32.mrf.mxu1 }
 0x279   : > { %v2594_v59 = vpop.f32.mrf.mxu1 }
 0x27b   : > { %v2596_v60 = vpop.f32.mrf.mxu1 }
 0x27d   : > { %v2598_v61 = vpop.f32.mrf.mxu1 }
 0x27f   : > { %v2600_v62 = vpop.f32.mrf.mxu1 }
 0x281   : > { %v2602_v63 = vpop.f32.mrf.mxu1 }
 0x282   : > { %3009 = vst [vmem:[#allocation20_spill] sm:$0xff] %v2602_v63 }
 0x283   : > { %v2604_v0 = vpop.f32.mrf.mxu1 }
 0x284   : > { %3010 = vst [vmem:[#allocation21_spill] sm:$0xff] %v2604_v0 }
 0x285   : > { %v2606_v3 = vpop.f32.mrf.mxu1 }
 0x286   : > { %3011 = vst [vmem:[#allocation22_spill] sm:$0xff] %v2606_v3 }
 0x287   : > { %v2608_v7 = vpop.f32.mrf.mxu1 }
 0x288   : > { %3012 = vst [vmem:[#allocation23_spill] sm:$0xff] %v2608_v7 }
 0x289   : > { %v2610_v8 = vpop.f32.mrf.mxu1 }
 0x28a   : > { %3013 = vst [vmem:[#allocation24_spill] sm:$0xff] %v2610_v8 }
 0x28b   : > { %v2612_v9 = vpop.f32.mrf.mxu1 }
 0x28c   : > { %3014 = vst [vmem:[#allocation25_spill] sm:$0xff] %v2612_v9 }
 0x28d   : > { %v2614_v10 = vpop.f32.mrf.mxu1 }
 0x28e   : > { %3015 = vst [vmem:[#allocation26_spill] sm:$0xff] %v2614_v10 }
 0x28f   : > { %v2616_v11 = vpop.f32.mrf.mxu1 }
 0x290   : > { %3016 = vst [vmem:[#allocation27_spill] sm:$0xff] %v2616_v11 }
 0x291   : > { %v2618_v12 = vpop.f32.mrf.mxu1 }
 0x292   : > { %3017 = vst [vmem:[#allocation28_spill] sm:$0xff] %v2618_v12 }
 0x293   : > { %v2620_v13 = vpop.f32.mrf.mxu1 }
 0x294   : > { %3018 = vst [vmem:[#allocation29_spill] sm:$0xff] %v2620_v13 }
 0x295   : > { %v2622_v14 = vpop.f32.mrf.mxu1 }
 0x296   : > { %3019 = vst [vmem:[#allocation30_spill] sm:$0xff] %v2622_v14 }
 0x297   : > { %v2624_v15 = vpop.f32.mrf.mxu1 }
 0x298   : > { %3020 = vst [vmem:[#allocation31_spill] sm:$0xff] %v2624_v15 }
 0x299   : > { %v2626_v16 = vpop.f32.mrf.mxu1 }
 0x29a   : > { %3021 = vst [vmem:[#allocation32_spill] sm:$0xff] %v2626_v16 }
 0x29b   : > { %v2628_v17 = vpop.f32.mrf.mxu1 }
 0x29c   : > { %3022 = vst [vmem:[#allocation33_spill] sm:$0xff] %v2628_v17 }
 0x29d   : > { %v2630_v18 = vpop.f32.mrf.mxu1 }
 0x29e   : > { %3023 = vst [vmem:[#allocation34_spill] sm:$0xff] %v2630_v18 }
 0x29f   : > { %v2632_v19 = vpop.f32.mrf.mxu1 }
 0x2a0   : > { %3024 = vst [vmem:[#allocation35_spill] sm:$0xff] %v2632_v19 }
 0x2a1   : > { %v2634_v20 = vpop.f32.mrf.mxu1 }
 0x2a2   : > { %3025 = vst [vmem:[#allocation36_spill] sm:$0xff] %v2634_v20 }
 0x2a3   : > { %v2636_v21 = vpop.f32.mrf.mxu1 }
 0x2a4   : > { %3026 = vst [vmem:[#allocation37_spill] sm:$0xff] %v2636_v21 }
 0x2a5   : > { %v2638_v4 = vpop.f32.mrf.mxu1 }
 0x2a6   : > { %3027 = vst [vmem:[#allocation38_spill] sm:$0xff] %v2638_v4  ;;  %1138 = sbr.rel (%p1823_p6) target bundleno = 715 (0x2cb), region = 60 }
 0x2a7   : > { %v2640_v2 = vpop.f32.mrf.mxu1 }
 0x2a8   : > { %3028 = vst [vmem:[#allocation39_spill] sm:$0xff] %v2640_v2 }
 0x2a9   : > { %v2642_v1 = vpop.f32.mrf.mxu1 }
 0x2aa   : > { %3029 = vst [vmem:[#allocation40_spill] sm:$0xff] %v2642_v1 }
 0x2ab   : > { %1139 = vst [vmem:[#allocation2 + $0xb0] sm:$0xff] %v2516_v22  ;;  %1140 = vst [vmem:[#allocation2 + $0x1b0] sm:$0xff] %v2518_v23 }
 0x2ac   : > { %1141 = vst [vmem:[#allocation2 + $0xd8] sm:$0xff] %v2520_v24  ;;  %1142 = vst [vmem:[#allocation2 + $0x18] sm:$0xff] %v2522_v25 }
 0x2ad   : > { %1143 = vst [vmem:[#allocation2 + $0x50] sm:$0xff] %v2524_v26  ;;  %1144 = vst [vmem:[#allocation2 + $0x168] sm:$0xff] %v2526_v5 }
 0x2ae   : > { %1145 = vst [vmem:[#allocation2 + $0x130] sm:$0xff] %v2528_v27  ;;  %1146 = vst [vmem:[#allocation2 + $0x48] sm:$0xff] %v2530_v6 }
 0x2af   : > { %1147 = vst [vmem:[#allocation2 + $0x180] sm:$0xff] %v2532_v28  ;;  %1148 = vst [vmem:[#allocation2 + $0x110] sm:$0xff] %v2534_v29 }
 0x2b0   : > { %1149 = vst [vmem:[#allocation2 + $0x118] sm:$0xff] %v2536_v30  ;;  %1150 = vst [vmem:[#allocation2 + $0x98] sm:$0xff] %v2538_v31 }
 0x2b1   : > { %1151 = vst [vmem:[#allocation2 + $0x120] sm:$0xff] %v2540_v32  ;;  %1152 = vst [vmem:[#allocation2 + $0x150] sm:$0xff] %v2542_v33 }
 0x2b2   : > { %1153 = vst [vmem:[#allocation2 + $0x108] sm:$0xff] %v2544_v34  ;;  %1154 = vst [vmem:[#allocation2 + $0x60] sm:$0xff] %v2546_v35 }
 0x2b3   : > { %1155 = vst [vmem:[#allocation2 + $0xe0] sm:$0xff] %v2548_v36  ;;  %1156 = vst [vmem:[#allocation2 + $0x188] sm:$0xff] %v2550_v37 }
 0x2b4   : > { %1157 = vst [vmem:[#allocation2 + $0x138] sm:$0xff] %v2552_v38  ;;  %1158 = vst [vmem:[#allocation2 + $0x140] sm:$0xff] %v2554_v39 }
 0x2b5   : > { %1159 = vst [vmem:[#allocation2 + $0x80] sm:$0xff] %v2556_v40  ;;  %1160 = vst [vmem:[#allocation2 + $0x1a8] sm:$0xff] %v2558_v41 }
 0x2b6   : > { %1161 = vst [vmem:[#allocation2 + $0x1b8] sm:$0xff] %v2560_v42  ;;  %1162 = vst [vmem:[#allocation2 + $0x28] sm:$0xff] %v2562_v43 }
 0x2b7   : > { %1163 = vst [vmem:[#allocation2 + $0x1e8] sm:$0xff] %v2564_v44  ;;  %1164 = vst [vmem:[#allocation2 + $0xf8] sm:$0xff] %v2566_v45 }
 0x2b8   : > { %1165 = vst [vmem:[#allocation2 + $0x160] sm:$0xff] %v2568_v46  ;;  %1166 = vst [vmem:[#allocation2 + $0x30] sm:$0xff] %v2570_v47 }
 0x2b9   : > { %1167 = vst [vmem:[#allocation2 + $0x1e0] sm:$0xff] %v2572_v48  ;;  %1168 = vst [vmem:[#allocation2] sm:$0xff] %v2574_v49 }
 0x2ba   : > { %1169 = vst [vmem:[#allocation2 + $0xf0] sm:$0xff] %v2576_v50  ;;  %1170 = vst [vmem:[#allocation2 + $0x8] sm:$0xff] %v2578_v51 }
 0x2bb   : > { %1171 = vst [vmem:[#allocation2 + $0x148] sm:$0xff] %v2580_v52  ;;  %1172 = vst [vmem:[#allocation2 + $0x1d0] sm:$0xff] %v2582_v53 }
 0x2bc   : > { %1173 = vst [vmem:[#allocation2 + $0x100] sm:$0xff] %v2584_v54  ;;  %1174 = vst [vmem:[#allocation2 + $0xc8] sm:$0xff] %v2586_v55 }
 0x2bd   : > { %1175 = vst [vmem:[#allocation2 + $0x40] sm:$0xff] %v2588_v56  ;;  %1176 = vst [vmem:[#allocation2 + $0x1f8] sm:$0xff] %v2590_v57 }
 0x2be   : > { %1177 = vst [vmem:[#allocation2 + $0x20] sm:$0xff] %v2592_v58  ;;  %1178 = vst [vmem:[#allocation2 + $0x128] sm:$0xff] %v2594_v59 }
 0x2bf   : > { %1179 = vst [vmem:[#allocation2 + $0x1a0] sm:$0xff] %v2596_v60  ;;  %1180 = vst [vmem:[#allocation2 + $0x1f0] sm:$0xff] %v2598_v61 }
 0x2c0   : > { %1181 = vst [vmem:[#allocation2 + $0xe8] sm:$0xff] %v2600_v62  ;;  %1182 = vst [vmem:[#allocation2 + $0x78] sm:$0xff] %v2602_v63 }
 0x2c1   : > { %1183 = vst [vmem:[#allocation2 + $0x70] sm:$0xff] %v2604_v0  ;;  %1184 = vst [vmem:[#allocation2 + $0x90] sm:$0xff] %v2606_v3 }
 0x2c2   : > { %1185 = vst [vmem:[#allocation2 + $0x1d8] sm:$0xff] %v2608_v7  ;;  %1186 = vst [vmem:[#allocation2 + $0xd0] sm:$0xff] %v2610_v8 }
 0x2c3   : > { %1187 = vst [vmem:[#allocation2 + $0xb8] sm:$0xff] %v2612_v9  ;;  %1188 = vst [vmem:[#allocation2 + $0x88] sm:$0xff] %v2614_v10 }
 0x2c4   : > { %1189 = vst [vmem:[#allocation2 + $0xa8] sm:$0xff] %v2616_v11  ;;  %1190 = vst [vmem:[#allocation2 + $0x1c8] sm:$0xff] %v2618_v12 }
 0x2c5   : > { %1191 = vst [vmem:[#allocation2 + $0x170] sm:$0xff] %v2620_v13  ;;  %1192 = vst [vmem:[#allocation2 + $0x178] sm:$0xff] %v2622_v14 }
 0x2c6   : > { %1193 = vst [vmem:[#allocation2 + $0x68] sm:$0xff] %v2624_v15  ;;  %1194 = vst [vmem:[#allocation2 + $0x190] sm:$0xff] %v2626_v16 }
 0x2c7   : > { %1195 = vst [vmem:[#allocation2 + $0x198] sm:$0xff] %v2628_v17  ;;  %1196 = vst [vmem:[#allocation2 + $0x38] sm:$0xff] %v2630_v18 }
 0x2c8   : > { %1197 = vst [vmem:[#allocation2 + $0xc0] sm:$0xff] %v2632_v19  ;;  %1198 = vst [vmem:[#allocation2 + $0x1c0] sm:$0xff] %v2634_v20 }
 0x2c9   : > { %1199 = vst [vmem:[#allocation2 + $0x158] sm:$0xff] %v2636_v21  ;;  %1200 = vst [vmem:[#allocation2 + $0x10] sm:$0xff] %v2638_v4 }
 0x2ca   : > { %1201 = vst [vmem:[#allocation2 + $0x58] sm:$0xff] %v2640_v2  ;;  %1202 = vst [vmem:[#allocation2 + $0xa0] sm:$0xff] %v2642_v1 }
 0x2cb PF: > { %p1204_p8 = scmp.ne.s32.totalorder %s2109_s21, 1 }
 0x2cd   : > { %p1205_p0 = pnand %p1823_p6, %p1204_p8 }
 0x2cf   : > { %1208 = sbr.rel (%p1205_p0) target bundleno = 763 (0x2fb), region = 64 }
 0x2d4   : > { %v1209_v19 = vld [vmem:[#allocation2 + $0xb0] sm:$0xff]  ;;  %v1211_v20 = vld [vmem:[#allocation2 + $0xd8] sm:$0xff]  ;;  %v1214_v16 = vld [vmem:[#allocation2 + $0x168] sm:$0xff] }
 0x2d5   : > { %v1210_v18 = vld [vmem:[#allocation2 + $0x1b0] sm:$0xff]  ;;  %v1273_v21 = vadd.f32 %v1209_v19, %v2516_v22  ;;  %v1275_v2 = vadd.f32 %v1211_v20, %v2520_v24  ;;  %v1212_v17 = vld [vmem:[#allocation2 + $0x18] sm:$0xff]  ;;  %v1278_v13 = vadd.f32 %v1214_v16, %v2526_v5  ;;  %v1216_v11 = vld [vmem:[#allocation2 + $0x48] sm:$0xff] }
 0x2d6   : > { %v1274_v4 = vadd.f32 %v1210_v18, %v2518_v23  ;;  %v1213_v1 = vld [vmem:[#allocation2 + $0x50] sm:$0xff]  ;;  %v1276_v15 = vadd.f32 %v1212_v17, %v2522_v25  ;;  %v1217_v10 = vld [vmem:[#allocation2 + $0x180] sm:$0xff]  ;;  %v1280_v18 = vadd.f32 %v1216_v11, %v2530_v6  ;;  %v1219_v23 = vld [vmem:[#allocation2 + $0x118] sm:$0xff] }
 0x2d7   : > { %v1277_v14 = vadd.f32 %v1213_v1, %v2524_v26  ;;  %v1215_v12 = vld [vmem:[#allocation2 + $0x130] sm:$0xff]  ;;  %1337 = vst [vmem:[#allocation2 + $0xb0] sm:$0xff] %v1273_v21  ;;  %1339 = vst [vmem:[#allocation2 + $0xd8] sm:$0xff] %v1275_v2  ;;  %v1281_v20 = vadd.f32 %v1217_v10, %v2532_v28  ;;  %v1220_v22 = vld [vmem:[#allocation2 + $0x98] sm:$0xff]  ;;  %v1283_v16 = vadd.f32 %v1219_v23, %v2536_v30 }
 0x2d8   : > { %1338 = vst [vmem:[#allocation2 + $0x1b0] sm:$0xff] %v1274_v4  ;;  %v1279_v19 = vadd.f32 %v1215_v12, %v2528_v27  ;;  %v1218_v24 = vld [vmem:[#allocation2 + $0x110] sm:$0xff]  ;;  %1340 = vst [vmem:[#allocation2 + $0x18] sm:$0xff] %v1276_v15  ;;  %v1284_v17 = vadd.f32 %v1220_v22, %v2538_v31  ;;  %v1221_v4 = vld [vmem:[#allocation2 + $0x120] sm:$0xff] }
 0x2d9   : > { %1341 = vst [vmem:[#allocation2 + $0x50] sm:$0xff] %v1277_v14  ;;  %1342 = vst [vmem:[#allocation2 + $0x168] sm:$0xff] %v1278_v13  ;;  %v1282_v1 = vadd.f32 %v1218_v24, %v2534_v29  ;;  %v1222_v2 = vld [vmem:[#allocation2 + $0x150] sm:$0xff]  ;;  %v1223_v21 = vld [vmem:[#allocation2 + $0x108] sm:$0xff]  ;;  %v1285_v10 = vadd.f32 %v1221_v4, %v2540_v32 }
 0x2da   : > { %1343 = vst [vmem:[#allocation2 + $0x130] sm:$0xff] %v1279_v19  ;;  %1344 = vst [vmem:[#allocation2 + $0x48] sm:$0xff] %v1280_v18  ;;  %v1286_v11 = vadd.f32 %v1222_v2, %v2542_v33  ;;  %v1287_v12 = vadd.f32 %v1223_v21, %v2544_v34  ;;  %v1224_v14 = vld [vmem:[#allocation2 + $0x60] sm:$0xff]  ;;  %v1226_v15 = vld [vmem:[#allocation2 + $0x188] sm:$0xff] }
 0x2db   : > { %1345 = vst [vmem:[#allocation2 + $0x180] sm:$0xff] %v1281_v20  ;;  %v1225_v13 = vld [vmem:[#allocation2 + $0xe0] sm:$0xff]  ;;  %1346 = vst [vmem:[#allocation2 + $0x110] sm:$0xff] %v1282_v1  ;;  %v1288_v22 = vadd.f32 %v1224_v14, %v2546_v35  ;;  %v1290_v24 = vadd.f32 %v1226_v15, %v2550_v37  ;;  %v1227_v19 = vld [vmem:[#allocation2 + $0x138] sm:$0xff] }
 0x2dc   : > { %1347 = vst [vmem:[#allocation2 + $0x118] sm:$0xff] %v1283_v16  ;;  %1348 = vst [vmem:[#allocation2 + $0x98] sm:$0xff] %v1284_v17  ;;  %v1289_v23 = vadd.f32 %v1225_v13, %v2548_v36  ;;  %v1228_v18 = vld [vmem:[#allocation2 + $0x140] sm:$0xff]  ;;  %v1291_v4 = vadd.f32 %v1227_v19, %v2552_v38  ;;  %v1230_v16 = vld [vmem:[#allocation2 + $0x1a8] sm:$0xff] }
 0x2dd   : > { %v1229_v20 = vld [vmem:[#allocation2 + $0x80] sm:$0xff]  ;;  %1349 = vst [vmem:[#allocation2 + $0x120] sm:$0xff] %v1285_v10  ;;  %1350 = vst [vmem:[#allocation2 + $0x150] sm:$0xff] %v1286_v11  ;;  %v1292_v2 = vadd.f32 %v1228_v18, %v2554_v39  ;;  %v1231_v17 = vld [vmem:[#allocation2 + $0x1b8] sm:$0xff]  ;;  %v1294_v14 = vadd.f32 %v1230_v16, %v2558_v41 }
 0x2de   : > { %1351 = vst [vmem:[#allocation2 + $0x108] sm:$0xff] %v1287_v12  ;;  %v1293_v1 = vadd.f32 %v1229_v20, %v2556_v40  ;;  %v1232_v21 = vld [vmem:[#allocation2 + $0x28] sm:$0xff]  ;;  %1352 = vst [vmem:[#allocation2 + $0x60] sm:$0xff] %v1288_v22  ;;  %v1295_v13 = vadd.f32 %v1231_v17, %v2560_v42  ;;  %v1234_v12 = vld [vmem:[#allocation2 + $0xf8] sm:$0xff] }
 0x2df   : > { %1353 = vst [vmem:[#allocation2 + $0xe0] sm:$0xff] %v1289_v23  ;;  %1354 = vst [vmem:[#allocation2 + $0x188] sm:$0xff] %v1290_v24  ;;  %v1296_v10 = vadd.f32 %v1232_v21, %v2562_v43  ;;  %v1233_v11 = vld [vmem:[#allocation2 + $0x1e8] sm:$0xff]  ;;  %v1235_v15 = vld [vmem:[#allocation2 + $0x160] sm:$0xff]  ;;  %v1298_v18 = vadd.f32 %v1234_v12, %v2566_v45 }
 0x2e0   : > { %1355 = vst [vmem:[#allocation2 + $0x138] sm:$0xff] %v1291_v4  ;;  %1356 = vst [vmem:[#allocation2 + $0x140] sm:$0xff] %v1292_v2  ;;  %v1297_v19 = vadd.f32 %v1233_v11, %v2564_v44  ;;  %v1299_v22 = vadd.f32 %v1235_v15, %v2568_v46  ;;  %v1236_v23 = vld [vmem:[#allocation2 + $0x30] sm:$0xff]  ;;  %v1237_v24 = vld [vmem:[#allocation2 + $0x1e0] sm:$0xff] }
 0x2e1   : > { %1357 = vst [vmem:[#allocation2 + $0x80] sm:$0xff] %v1293_v1  ;;  %v1238_v20 = vld [vmem:[#allocation2] sm:$0xff]  ;;  %1358 = vst [vmem:[#allocation2 + $0x1a8] sm:$0xff] %v1294_v14  ;;  %v1300_v16 = vadd.f32 %v1236_v23, %v2570_v47  ;;  %v1301_v17 = vadd.f32 %v1237_v24, %v2572_v48  ;;  %v1239_v2 = vld [vmem:[#allocation2 + $0xf0] sm:$0xff] }
 0x2e2   : > { %1359 = vst [vmem:[#allocation2 + $0x1b8] sm:$0xff] %v1295_v13  ;;  %1360 = vst [vmem:[#allocation2 + $0x28] sm:$0xff] %v1296_v10  ;;  %v1302_v4 = vadd.f32 %v1238_v20, %v2574_v49  ;;  %v1240_v1 = vld [vmem:[#allocation2 + $0x8] sm:$0xff]  ;;  %v1303_v11 = vadd.f32 %v1239_v2, %v2576_v50  ;;  %v1242_v13 = vld [vmem:[#allocation2 + $0x1d0] sm:$0xff] }
 0x2e3   : > { %v1241_v21 = vld [vmem:[#allocation2 + $0x148] sm:$0xff]  ;;  %1361 = vst [vmem:[#allocation2 + $0x1e8] sm:$0xff] %v1297_v19  ;;  %1362 = vst [vmem:[#allocation2 + $0xf8] sm:$0xff] %v1298_v18  ;;  %v1304_v12 = vadd.f32 %v1240_v1, %v2578_v51  ;;  %v1243_v10 = vld [vmem:[#allocation2 + $0x100] sm:$0xff]  ;;  %v1306_v23 = vadd.f32 %v1242_v13, %v2582_v53 }
 0x2e4   : > { %1363 = vst [vmem:[#allocation2 + $0x160] sm:$0xff] %v1299_v22  ;;  %v1305_v14 = vadd.f32 %v1241_v21, %v2580_v52  ;;  %v1244_v15 = vld [vmem:[#allocation2 + $0xc8] sm:$0xff]  ;;  %1364 = vst [vmem:[#allocation2 + $0x30] sm:$0xff] %v1300_v16  ;;  %v1307_v24 = vadd.f32 %v1243_v10, %v2584_v54  ;;  %v1245_v18 = vld [vmem:[#allocation2 + $0x40] sm:$0xff] }
 0x2e5   : > { %1365 = vst [vmem:[#allocation2 + $0x1e0] sm:$0xff] %v1301_v17  ;;  %1366 = vst [vmem:[#allocation2] sm:$0xff] %v1302_v4  ;;  %v1308_v19 = vadd.f32 %v1244_v15, %v2586_v55  ;;  %v1246_v22 = vld [vmem:[#allocation2 + $0x1f8] sm:$0xff]  ;;  %v1247_v20 = vld [vmem:[#allocation2 + $0x20] sm:$0xff]  ;;  %v1309_v2 = vadd.f32 %v1245_v18, %v2588_v56 }
 0x2e6   : > { %1367 = vst [vmem:[#allocation2 + $0xf0] sm:$0xff] %v1303_v11  ;;  %1368 = vst [vmem:[#allocation2 + $0x8] sm:$0xff] %v1304_v12  ;;  %v1310_v1 = vadd.f32 %v1246_v22, %v2590_v57  ;;  %v1311_v16 = vadd.f32 %v1247_v20, %v2592_v58  ;;  %v1248_v17 = vld [vmem:[#allocation2 + $0x128] sm:$0xff]  ;;  %v1249_v4 = vld [vmem:[#allocation2 + $0x1a0] sm:$0xff] }
 0x2e7   : > { %1369 = vst [vmem:[#allocation2 + $0x148] sm:$0xff] %v1305_v14  ;;  %v1250_v21 = vld [vmem:[#allocation2 + $0x1f0] sm:$0xff]  ;;  %1370 = vst [vmem:[#allocation2 + $0x1d0] sm:$0xff] %v1306_v23  ;;  %v1312_v13 = vadd.f32 %v1248_v17, %v2594_v59  ;;  %v1313_v10 = vadd.f32 %v1249_v4, %v2596_v60  ;;  %v1251_v12 = vld [vmem:[#allocation2 + $0xe8] sm:$0xff] }
 0x2e8   : > { %1371 = vst [vmem:[#allocation2 + $0x100] sm:$0xff] %v1307_v24  ;;  %1372 = vst [vmem:[#allocation2 + $0xc8] sm:$0xff] %v1308_v19  ;;  %v1314_v11 = vadd.f32 %v1250_v21, %v2598_v61  ;;  %v1252_v14 = vld [vmem:[#allocation2 + $0x78] sm:$0xff]  ;;  %v1253_v15 = vld [vmem:[#allocation2 + $0x70] sm:$0xff]  ;;  %v1315_v18 = vadd.f32 %v1251_v12, %v2600_v62 }
 0x2e9   : > { %1373 = vst [vmem:[#allocation2 + $0x40] sm:$0xff] %v1309_v2  ;;  %1374 = vst [vmem:[#allocation2 + $0x1f8] sm:$0xff] %v1310_v1  ;;  %v1316_v22 = vadd.f32 %v1252_v14, %v2602_v63  ;;  %v1317_v23 = vadd.f32 %v1253_v15, %v2604_v0  ;;  %v1254_v24 = vld [vmem:[#allocation2 + $0x90] sm:$0xff]  ;;  %v1255_v19 = vld [vmem:[#allocation2 + $0x1d8] sm:$0xff] }
 0x2ea   : > { %1375 = vst [vmem:[#allocation2 + $0x20] sm:$0xff] %v1311_v16  ;;  %v1256_v20 = vld [vmem:[#allocation2 + $0xd0] sm:$0xff]  ;;  %1376 = vst [vmem:[#allocation2 + $0x128] sm:$0xff] %v1312_v13  ;;  %v1318_v17 = vadd.f32 %v1254_v24, %v2606_v3  ;;  %v1319_v4 = vadd.f32 %v1255_v19, %v2608_v7  ;;  %v1257_v1 = vld [vmem:[#allocation2 + $0xb8] sm:$0xff] }
 0x2eb   : > { %1377 = vst [vmem:[#allocation2 + $0x1a0] sm:$0xff] %v1313_v10  ;;  %1378 = vst [vmem:[#allocation2 + $0x1f0] sm:$0xff] %v1314_v11  ;;  %v1320_v2 = vadd.f32 %v1256_v20, %v2610_v8  ;;  %v1258_v16 = vld [vmem:[#allocation2 + $0x88] sm:$0xff]  ;;  %v1321_v12 = vadd.f32 %v1257_v1, %v2612_v9  ;;  %v3030_v14 = vld [vmem:[#allocation26_spill] sm:$0xff] }
 0x2ec   : > { %v1259_v21 = vld [vmem:[#allocation2 + $0xa8] sm:$0xff]  ;;  %1379 = vst [vmem:[#allocation2 + $0xe8] sm:$0xff] %v1315_v18  ;;  %1380 = vst [vmem:[#allocation2 + $0x78] sm:$0xff] %v1316_v22  ;;  %v1322_v15 = vadd.f32 %v1258_v16, %v3030_v14  ;;  %v3031_v0 = vld [vmem:[#allocation27_spill] sm:$0xff] }
 0x2ed   : > { %1381 = vst [vmem:[#allocation2 + $0x70] sm:$0xff] %v1317_v23  ;;  %v1323_v13 = vadd.f32 %v1259_v21, %v3031_v0  ;;  %v1260_v10 = vld [vmem:[#allocation2 + $0x1c8] sm:$0xff]  ;;  %v1261_v11 = vld [vmem:[#allocation2 + $0x170] sm:$0xff]  ;;  %v1262_v63 = vld [vmem:[#allocation2 + $0x178] sm:$0xff] }
 0x2ee   : > { %1382 = vst [vmem:[#allocation2 + $0x90] sm:$0xff] %v1318_v17  ;;  %1383 = vst [vmem:[#allocation2 + $0x1d8] sm:$0xff] %v1319_v4  ;;  %v3032_v24 = vld [vmem:[#allocation28_spill] sm:$0xff]  ;;  %v3033_v20 = vld [vmem:[#allocation29_spill] sm:$0xff] }
 0x2ef   : > { %1384 = vst [vmem:[#allocation2 + $0xd0] sm:$0xff] %v1320_v2  ;;  %v1324_v19 = vadd.f32 %v1260_v10, %v3032_v24  ;;  %v1325_v8 = vadd.f32 %v1261_v11, %v3033_v20  ;;  %v3034_v7 = vld [vmem:[#allocation30_spill] sm:$0xff]  ;;  %v1263_v22 = vld [vmem:[#allocation2 + $0x68] sm:$0xff]  ;;  %1385 = vst [vmem:[#allocation2 + $0xb8] sm:$0xff] %v1321_v12 }
 0x2f0   : > { %v1326_v18 = vadd.f32 %v1262_v63, %v3034_v7  ;;  %v1264_v23 = vld [vmem:[#allocation2 + $0x190] sm:$0xff]  ;;  %v1265_v3 = vld [vmem:[#allocation2 + $0x198] sm:$0xff]  ;;  %1386 = vst [vmem:[#allocation2 + $0x88] sm:$0xff] %v1322_v15  ;;  %1387 = vst [vmem:[#allocation2 + $0xa8] sm:$0xff] %v1323_v13 }
 0x2f1   : > { %v3035_v1 = vld [vmem:[#allocation31_spill] sm:$0xff]  ;;  %v3036_v16 = vld [vmem:[#allocation32_spill] sm:$0xff]  ;;  %v3037_v14 = vld [vmem:[#allocation33_spill] sm:$0xff]  ;;  %1388 = vst [vmem:[#allocation2 + $0x1c8] sm:$0xff] %v1324_v19 }
 0x2f2   : > { %v1327_v0 = vadd.f32 %v1263_v22, %v3035_v1  ;;  %v1328_v21 = vadd.f32 %v1264_v23, %v3036_v16  ;;  %v1329_v17 = vadd.f32 %v1265_v3, %v3037_v14  ;;  %v1266_v4 = vld [vmem:[#allocation2 + $0x38] sm:$0xff]  ;;  %v1267_v2 = vld [vmem:[#allocation2 + $0xc0] sm:$0xff]  ;;  %1389 = vst [vmem:[#allocation2 + $0x170] sm:$0xff] %v1325_v8  ;;  %1390 = vst [vmem:[#allocation2 + $0x178] sm:$0xff] %v1326_v18 }
 0x2f3   : > { %v1268_v9 = vld [vmem:[#allocation2 + $0x1c0] sm:$0xff]  ;;  %v3038_v10 = vld [vmem:[#allocation34_spill] sm:$0xff]  ;;  %v3041_v22 = vld [vmem:[#allocation37_spill] sm:$0xff] }
 0x2f4   : > { %v1330_v63 = vadd.f32 %v1266_v4, %v3038_v10  ;;  %v3039_v7 = vld [vmem:[#allocation35_spill] sm:$0xff]  ;;  %v3040_v24 = vld [vmem:[#allocation36_spill] sm:$0xff]  ;;  %v1270_v13 = vld [vmem:[#allocation2 + $0x10] sm:$0xff]  ;;  %1391 = vst [vmem:[#allocation2 + $0x68] sm:$0xff] %v1327_v0 }
 0x2f5   : > { %v1331_v11 = vadd.f32 %v1267_v2, %v3039_v7  ;;  %v1332_v12 = vadd.f32 %v1268_v9, %v3040_v24  ;;  %v1269_v15 = vld [vmem:[#allocation2 + $0x158] sm:$0xff]  ;;  %1392 = vst [vmem:[#allocation2 + $0x190] sm:$0xff] %v1328_v21  ;;  %1393 = vst [vmem:[#allocation2 + $0x198] sm:$0xff] %v1329_v17  ;;  %v1272_v8 = vld [vmem:[#allocation2 + $0xa0] sm:$0xff] }
 0x2f6   : > { %v1271_v20 = vld [vmem:[#allocation2 + $0x58] sm:$0xff]  ;;  %v1333_v3 = vadd.f32 %v1269_v15, %v3041_v22  ;;  %1394 = vst [vmem:[#allocation2 + $0x38] sm:$0xff] %v1330_v63  ;;  %v3044_v18 = vld [vmem:[#allocation40_spill] sm:$0xff] }
 0x2f7   : > { %v3042_v23 = vld [vmem:[#allocation38_spill] sm:$0xff]  ;;  %v3043_v16 = vld [vmem:[#allocation39_spill] sm:$0xff]  ;;  %1395 = vst [vmem:[#allocation2 + $0xc0] sm:$0xff] %v1331_v11  ;;  %1396 = vst [vmem:[#allocation2 + $0x1c0] sm:$0xff] %v1332_v12  ;;  %v1336_v14 = vadd.f32 %v1272_v8, %v3044_v18 }
 0x2f8   : > { %v1334_v1 = vadd.f32 %v1270_v13, %v3042_v23  ;;  %v1335_v19 = vadd.f32 %v1271_v20, %v3043_v16  ;;  %1397 = vst [vmem:[#allocation2 + $0x158] sm:$0xff] %v1333_v3 }
 0x2f9   : > { %1400 = vst [vmem:[#allocation2 + $0xa0] sm:$0xff] %v1336_v14 }
 0x2fa   : > { %1398 = vst [vmem:[#allocation2 + $0x10] sm:$0xff] %v1334_v1  ;;  %1399 = vst [vmem:[#allocation2 + $0x58] sm:$0xff] %v1335_v19 }
 0x2fb PF: > { %1404 = sbr.rel (%p1204_p8) target bundleno = 813 (0x32d), region = 68 }
 0x300   : > { %v1405_v9 = vld [vmem:[#allocation2 + $0xb0] sm:$0xff]  ;;  %v1533_v0 = vld [vmem:[%s2955_s4] sm:$0x3]  ;;  %v3046_v2 = vld [vmem:[#allocation16_spill] sm:$0xff] }
 0x301   : > { %v1406_v21 = vld [vmem:[#allocation2 + $0x1b0] sm:$0xff]  ;;  %v3047_v10 = vsub.s32 0, %v3046_v2  ;;  %v3049_v24 = vsub.s32 1, %v3046_v2  ;;  %v1407_v15 = vld [vmem:[#allocation2 + $0xd8] sm:$0xff]  ;;  %v1410_v16 = vld [vmem:[#allocation2 + $0x168] sm:$0xff] }
 0x302   : > { %v3045_v17 = vld [vmem:[#allocation17_spill] sm:$0xff]  ;;  %v3048_v7 = vld [vmem:[#allocation18_spill] sm:$0xff]  ;;  %v3050_v22 = vld [vmem:[#allocation19_spill] sm:$0xff] }
 0x303   : > { %v1469_v4 = vadd.f32 %v1405_v9, %v3045_v17  ;;  %v2788_v63 = vrot.slane %v1533_v0, %v3047_v10  ;;  %v1470_v11 = vadd.f32 %v1406_v21, %v3048_v7  ;;  %v2793_v12 = vrot.slane %v1533_v0, %v3049_v24  ;;  %v1408_v13 = vld [vmem:[#allocation2 + $0x18] sm:$0xff]  ;;  %v1409_v20 = vld [vmem:[#allocation2 + $0x50] sm:$0xff]  ;;  %v1412_v8 = vld [vmem:[#allocation2 + $0x48] sm:$0xff] }
 0x304   : > { %v1471_v3 = vadd.f32 %v1407_v15, %v3050_v22  ;;  %v1472_v23 = vadd.f32 %v1408_v13, %v2522_v25  ;;  %v1473_v1 = vadd.f32 %v1409_v20, %v2524_v26  ;;  %v1411_v19 = vld [vmem:[#allocation2 + $0x130] sm:$0xff]  ;;  %v1474_v9 = vadd.f32 %v1410_v16, %v2526_v5  ;;  %v1413_v21 = vld [vmem:[#allocation2 + $0x180] sm:$0xff]  ;;  %v1415_v2 = vld [vmem:[#allocation2 + $0x118] sm:$0xff] }
 0x305   : > { %v1545_v18 = vadd.f32 %v2788_v63, %v1469_v4  ;;  %v1546_v14 = vadd.f32 %v2793_v12, %v1470_v11  ;;  %v1475_v0 = vadd.f32 %v1411_v19, %v2528_v27  ;;  %v1414_v17 = vld [vmem:[#allocation2 + $0x110] sm:$0xff]  ;;  %v1476_v7 = vadd.f32 %v1412_v8, %v2530_v6  ;;  %v1416_v24 = vld [vmem:[#allocation2 + $0x98] sm:$0xff]  ;;  %v1417_v15 = vld [vmem:[#allocation2 + $0x120] sm:$0xff] }
 0x306   : > { %v1547_v10 = vadd.f32 %v2788_v63, %v1471_v3  ;;  %v1548_v25 = vadd.f32 %v2793_v12, %v1472_v23  ;;  %v1549_v26 = vadd.f32 %v2788_v63, %v1473_v1  ;;  %v1418_v4 = vld [vmem:[#allocation2 + $0x150] sm:$0xff]  ;;  %v1550_v5 = vadd.f32 %v2793_v12, %v1474_v9  ;;  %v1419_v20 = vld [vmem:[#allocation2 + $0x108] sm:$0xff]  ;;  %v1420_v22 = vld [vmem:[#allocation2 + $0x60] sm:$0xff] }
 0x307   : > { %1609 = vst [vmem:[#allocation11] sm:$0xff] %v1545_v18  ;;  %1610 = vst [vmem:[#allocation11 + $0x8] sm:$0xff] %v1546_v14  ;;  %v1551_v27 = vadd.f32 %v2788_v63, %v1475_v0  ;;  %v1477_v11 = vadd.f32 %v1413_v21, %v2532_v28  ;;  %v1478_v13 = vadd.f32 %v1414_v17, %v2534_v29  ;;  %v1421_v16 = vld [vmem:[#allocation2 + $0xe0] sm:$0xff]  ;;  %v1422_v19 = vld [vmem:[#allocation2 + $0x188] sm:$0xff] }
 0x308   : > { %1611 = vst [vmem:[#allocation11 + $0x10] sm:$0xff] %v1547_v10  ;;  %1612 = vst [vmem:[#allocation11 + $0x18] sm:$0xff] %v1548_v25  ;;  %v1552_v6 = vadd.f32 %v2793_v12, %v1476_v7  ;;  %v1479_v3 = vadd.f32 %v1415_v2, %v2536_v30  ;;  %v1480_v23 = vadd.f32 %v1416_v24, %v2538_v31  ;;  %v1423_v14 = vld [vmem:[#allocation2 + $0x138] sm:$0xff]  ;;  %v1424_v9 = vld [vmem:[#allocation2 + $0x140] sm:$0xff] }
 0x309   : > { %1613 = vst [vmem:[#allocation11 + $0x20] sm:$0xff] %v1549_v26  ;;  %v1481_v1 = vadd.f32 %v1417_v15, %v2540_v32  ;;  %1614 = vst [vmem:[#allocation11 + $0x28] sm:$0xff] %v1550_v5  ;;  %v1553_v28 = vadd.f32 %v2788_v63, %v1477_v11  ;;  %v1554_v29 = vadd.f32 %v2793_v12, %v1478_v13  ;;  %v1425_v0 = vld [vmem:[#allocation2 + $0x80] sm:$0xff]  ;;  %v1426_v17 = vld [vmem:[#allocation2 + $0x1a8] sm:$0xff] }
 0x30a   : > { %1615 = vst [vmem:[#allocation11 + $0x30] sm:$0xff] %v1551_v27  ;;  %v1482_v8 = vadd.f32 %v1418_v4, %v2542_v33  ;;  %v1483_v18 = vadd.f32 %v1419_v20, %v2544_v34  ;;  %1616 = vst [vmem:[#allocation11 + $0x38] sm:$0xff] %v1552_v6  ;;  %v1555_v30 = vadd.f32 %v2788_v63, %v1479_v3  ;;  %v1427_v2 = vld [vmem:[#allocation2 + $0x1b8] sm:$0xff]  ;;  %v1428_v26 = vld [vmem:[#allocation2 + $0x28] sm:$0xff] }
 0x30b   : > { %v1556_v31 = vadd.f32 %v2793_v12, %v1480_v23  ;;  %v1557_v32 = vadd.f32 %v2788_v63, %v1481_v1  ;;  %v1484_v21 = vadd.f32 %v1420_v22, %v2546_v35  ;;  %1617 = vst [vmem:[#allocation11 + $0x40] sm:$0xff] %v1553_v28  ;;  %1618 = vst [vmem:[#allocation11 + $0x48] sm:$0xff] %v1554_v29  ;;  %v1429_v4 = vld [vmem:[#allocation2 + $0x1e8] sm:$0xff]  ;;  %v1430_v5 = vld [vmem:[#allocation2 + $0xf8] sm:$0xff] }
 0x30c   : > { %v1558_v33 = vadd.f32 %v2793_v12, %v1482_v8  ;;  %v1559_v34 = vadd.f32 %v2788_v63, %v1483_v18  ;;  %v1485_v10 = vadd.f32 %v1421_v16, %v2548_v36  ;;  %v1486_v25 = vadd.f32 %v1422_v19, %v2550_v37  ;;  %1619 = vst [vmem:[#allocation11 + $0x50] sm:$0xff] %v1555_v30  ;;  %v1431_v13 = vld [vmem:[#allocation2 + $0x160] sm:$0xff]  ;;  %v1432_v20 = vld [vmem:[#allocation2 + $0x30] sm:$0xff]  ;;  %v1436_v19 = vld [vmem:[#allocation2 + $0x8] sm:$0xff] }
 0x30d   : > { %1620 = vst [vmem:[#allocation11 + $0x58] sm:$0xff] %v1556_v31  ;;  %1621 = vst [vmem:[#allocation11 + $0x60] sm:$0xff] %v1557_v32  ;;  %v1560_v7 = vadd.f32 %v2793_v12, %v1484_v21  ;;  %v1487_v35 = vadd.f32 %v1423_v14, %v2552_v38  ;;  %v1488_v24 = vadd.f32 %v1424_v9, %v2554_v39  ;;  %v1433_v22 = vld [vmem:[#allocation2 + $0x1e0] sm:$0xff]  ;;  %v1435_v23 = vld [vmem:[#allocation2 + $0xf0] sm:$0xff] }
 0x30e   : > { %v1489_v15 = vadd.f32 %v1425_v0, %v2556_v40  ;;  %1622 = vst [vmem:[#allocation11 + $0x68] sm:$0xff] %v1558_v33  ;;  %1623 = vst [vmem:[#allocation11 + $0x70] sm:$0xff] %v1559_v34  ;;  %v1561_v36 = vadd.f32 %v2788_v63, %v1485_v10  ;;  %v1562_v37 = vadd.f32 %v2793_v12, %v1486_v25  ;;  %v1434_v3 = vld [vmem:[#allocation2] sm:$0xff]  ;;  %v1437_v18 = vld [vmem:[#allocation2 + $0x148] sm:$0xff] }
 0x30f   : > { %v1490_v27 = vadd.f32 %v1426_v17, %v2558_v41  ;;  %v1491_v11 = vadd.f32 %v1427_v2, %v2560_v42  ;;  %1624 = vst [vmem:[#allocation11 + $0x78] sm:$0xff] %v1560_v7  ;;  %v1563_v38 = vadd.f32 %v2788_v63, %v1487_v35  ;;  %v1564_v39 = vadd.f32 %v2793_v12, %v1488_v24  ;;  %v1438_v14 = vld [vmem:[#allocation2 + $0x1d0] sm:$0xff]  ;;  %v1439_v30 = vld [vmem:[#allocation2 + $0x100] sm:$0xff]  ;;  %v1440_v31 = vld [vmem:[#allocation2 + $0xc8] sm:$0xff] }
 0x310   : > { %v1565_v40 = vadd.f32 %v2788_v63, %v1489_v15  ;;  %v1492_v6 = vadd.f32 %v1428_v26, %v2562_v43  ;;  %1625 = vst [vmem:[#allocation11 + $0x80] sm:$0xff] %v1561_v36  ;;  %1626 = vst [vmem:[#allocation11 + $0x88] sm:$0xff] %v1562_v37  ;;  %v1493_v1 = vadd.f32 %v1429_v4, %v2564_v44  ;;  %v1441_v32 = vld [vmem:[#allocation2 + $0x40] sm:$0xff]  ;;  %v1442_v17 = vld [vmem:[#allocation2 + $0x1f8] sm:$0xff] }
 0x311   : > { %v1566_v41 = vadd.f32 %v2793_v12, %v1490_v27  ;;  %v1567_v42 = vadd.f32 %v2788_v63, %v1491_v11  ;;  %v1494_v16 = vadd.f32 %v1430_v5, %v2566_v45  ;;  %1627 = vst [vmem:[#allocation11 + $0x90] sm:$0xff] %v1563_v38  ;;  %1628 = vst [vmem:[#allocation11 + $0x98] sm:$0xff] %v1564_v39  ;;  %v1443_v2 = vld [vmem:[#allocation2 + $0x20] sm:$0xff]  ;;  %v1444_v10 = vld [vmem:[#allocation2 + $0x128] sm:$0xff] }
 0x312   : > { %1629 = vst [vmem:[#allocation11 + $0xa0] sm:$0xff] %v1565_v40  ;;  %v1568_v28 = vadd.f32 %v2793_v12, %v1492_v6  ;;  %v1495_v43 = vadd.f32 %v1431_v13, %v2568_v46  ;;  %v1496_v29 = vadd.f32 %v1432_v20, %v2570_v47  ;;  %v1497_v8 = vadd.f32 %v1433_v22, %v2572_v48  ;;  %v1445_v35 = vld [vmem:[#allocation2 + $0x1a0] sm:$0xff]  ;;  %v1446_v24 = vld [vmem:[#allocation2 + $0x1f0] sm:$0xff]  ;;  %v1447_v5 = vld [vmem:[#allocation2 + $0xe8] sm:$0xff] }
 0x313   : > { %1630 = vst [vmem:[#allocation11 + $0xa8] sm:$0xff] %v1566_v41  ;;  %1631 = vst [vmem:[#allocation11 + $0xb0] sm:$0xff] %v1567_v42  ;;  %v1569_v44 = vadd.f32 %v2788_v63, %v1493_v1  ;;  %v1570_v45 = vadd.f32 %v2793_v12, %v1494_v16  ;;  %v1498_v9 = vadd.f32 %v1434_v3, %v2574_v49  ;;  %v1448_v36 = vld [vmem:[#allocation2 + $0x78] sm:$0xff]  ;;  %v1449_v37 = vld [vmem:[#allocation2 + $0x70] sm:$0xff] }
 0x314   : > { %v1499_v0 = vadd.f32 %v1435_v23, %v2576_v50  ;;  %1632 = vst [vmem:[#allocation11 + $0xb8] sm:$0xff] %v1568_v28  ;;  %v1571_v46 = vadd.f32 %v2788_v63, %v1495_v43  ;;  %v1572_v47 = vadd.f32 %v2793_v12, %v1496_v29  ;;  %v1573_v48 = vadd.f32 %v2788_v63, %v1497_v8  ;;  %v1450_v11 = vld [vmem:[#allocation2 + $0x90] sm:$0xff]  ;;  %v1451_v13 = vld [vmem:[#allocation2 + $0x1d8] sm:$0xff]  ;;  %v3051_v40 = vld [vmem:[#allocation20_spill] sm:$0xff] }
 0x315   : > { %v1500_v21 = vadd.f32 %v1436_v19, %v2578_v51  ;;  %1633 = vst [vmem:[#allocation11 + $0xc0] sm:$0xff] %v1569_v44  ;;  %1634 = vst [vmem:[#allocation11 + $0xc8] sm:$0xff] %v1570_v45  ;;  %v1574_v49 = vadd.f32 %v2793_v12, %v1498_v9  ;;  %v1501_v33 = vadd.f32 %v1437_v18, %v2580_v52  ;;  %v1452_v38 = vld [vmem:[#allocation2 + $0xd0] sm:$0xff]  ;;  %v1453_v41 = vld [vmem:[#allocation2 + $0xb8] sm:$0xff] }
 0x316   : > { %v1575_v50 = vadd.f32 %v2788_v63, %v1499_v0  ;;  %v1502_v34 = vadd.f32 %v1438_v14, %v2582_v53  ;;  %1635 = vst [vmem:[#allocation11 + $0xd0] sm:$0xff] %v1571_v46  ;;  %1636 = vst [vmem:[#allocation11 + $0xd8] sm:$0xff] %v1572_v47  ;;  %v1503_v51 = vadd.f32 %v1439_v30, %v2584_v54  ;;  %v3052_v3 = vld [vmem:[#allocation21_spill] sm:$0xff]  ;;  %v3053_v1 = vld [vmem:[#allocation22_spill] sm:$0xff] }
 0x317   : > { %1637 = vst [vmem:[#allocation11 + $0xe0] sm:$0xff] %v1573_v48  ;;  %v1576_v25 = vadd.f32 %v2793_v12, %v1500_v21  ;;  %v1504_v26 = vadd.f32 %v1440_v31, %v2586_v55  ;;  %v1505_v7 = vadd.f32 %v1441_v32, %v2588_v56  ;;  %1638 = vst [vmem:[#allocation11 + $0xe8] sm:$0xff] %v1574_v49  ;;  %v1454_v42 = vld [vmem:[#allocation2 + $0x88] sm:$0xff]  ;;  %v3054_v19 = vld [vmem:[#allocation23_spill] sm:$0xff] }
 0x318   : > { %1639 = vst [vmem:[#allocation11 + $0xf0] sm:$0xff] %v1575_v50  ;;  %v1577_v52 = vadd.f32 %v2788_v63, %v1501_v33  ;;  %v1578_v53 = vadd.f32 %v2793_v12, %v1502_v34  ;;  %v1506_v15 = vadd.f32 %v1442_v17, %v2590_v57  ;;  %v1507_v4 = vadd.f32 %v1443_v2, %v2592_v58  ;;  %v1455_v43 = vld [vmem:[#allocation2 + $0xa8] sm:$0xff]  ;;  %v1457_v8 = vld [vmem:[#allocation2 + $0x170] sm:$0xff]  ;;  %v1458_v9 = vld [vmem:[#allocation2 + $0x178] sm:$0xff] }
 0x319   : > { %1640 = vst [vmem:[#allocation11 + $0xf8] sm:$0xff] %v1576_v25  ;;  %v1579_v54 = vadd.f32 %v2788_v63, %v1503_v51  ;;  %v1580_v55 = vadd.f32 %v2793_v12, %v1504_v26  ;;  %v1581_v56 = vadd.f32 %v2788_v63, %v1505_v7  ;;  %v1508_v27 = vadd.f32 %v1444_v10, %v2594_v59  ;;  %v1456_v29 = vld [vmem:[#allocation2 + $0x1c8] sm:$0xff]  ;;  %v3057_v47 = vld [vmem:[#allocation26_spill] sm:$0xff]  ;;  %v3058_v2 = vld [vmem:[#allocation27_spill] sm:$0xff] }
 0x31a   : > { %1641 = vst [vmem:[#allocation11 + $0x100] sm:$0xff] %v1577_v52  ;;  %1642 = vst [vmem:[#allocation11 + $0x108] sm:$0xff] %v1578_v53  ;;  %v1582_v57 = vadd.f32 %v2793_v12, %v1506_v15  ;;  %v1583_v58 = vadd.f32 %v2788_v63, %v1507_v4  ;;  %v1509_v20 = vadd.f32 %v1445_v35, %v2596_v60  ;;  %v3055_v44 = vld [vmem:[#allocation24_spill] sm:$0xff]  ;;  %v3056_v32 = vld [vmem:[#allocation25_spill] sm:$0xff] }
 0x31b   : > { %v1510_v22 = vadd.f32 %v1446_v24, %v2598_v61  ;;  %1643 = vst [vmem:[#allocation11 + $0x110] sm:$0xff] %v1579_v54  ;;  %1644 = vst [vmem:[#allocation11 + $0x118] sm:$0xff] %v1580_v55  ;;  %v1584_v39 = vadd.f32 %v2793_v12, %v1508_v27  ;;  %v1511_v59 = vadd.f32 %v1447_v5, %v2600_v62  ;;  %v1459_v0 = vld [vmem:[#allocation2 + $0x68] sm:$0xff]  ;;  %v1460_v21 = vld [vmem:[#allocation2 + $0x190] sm:$0xff] }
 0x31c   : > { %1645 = vst [vmem:[#allocation11 + $0x120] sm:$0xff] %v1581_v56  ;;  %v1512_v6 = vadd.f32 %v1448_v36, %v3051_v40  ;;  %v1513_v23 = vadd.f32 %v1449_v37, %v3052_v3  ;;  %1646 = vst [vmem:[#allocation11 + $0x128] sm:$0xff] %v1582_v57  ;;  %v1585_v60 = vadd.f32 %v2788_v63, %v1509_v20  ;;  %v3059_v50 = vld [vmem:[#allocation28_spill] sm:$0xff]  ;;  %v3060_v34 = vld [vmem:[#allocation29_spill] sm:$0xff] }
 0x31d   : > { %1647 = vst [vmem:[#allocation11 + $0x130] sm:$0xff] %v1583_v58  ;;  %v1586_v61 = vadd.f32 %v2793_v12, %v1510_v22  ;;  %v1514_v16 = vadd.f32 %v1450_v11, %v3053_v1  ;;  %v1515_v28 = vadd.f32 %v1451_v13, %v3054_v19  ;;  %1648 = vst [vmem:[#allocation11 + $0x138] sm:$0xff] %v1584_v39  ;;  %v1461_v25 = vld [vmem:[#allocation2 + $0x198] sm:$0xff]  ;;  %v1463_v15 = vld [vmem:[#allocation2 + $0xc0] sm:$0xff] }
 0x31e   : > { %v1587_v62 = vadd.f32 %v2788_v63, %v1511_v59  ;;  %v1588_v18 = vadd.f32 %v2793_v12, %v1512_v6  ;;  %v1589_v14 = vadd.f32 %v2788_v63, %v1513_v23  ;;  %v1516_v45 = vadd.f32 %v1452_v38, %v3055_v44  ;;  %1649 = vst [vmem:[#allocation11 + $0x140] sm:$0xff] %v1585_v60  ;;  %v1462_v51 = vld [vmem:[#allocation2 + $0x38] sm:$0xff]  ;;  %v1464_v4 = vld [vmem:[#allocation2 + $0x1c0] sm:$0xff]  ;;  %v1466_v27 = vld [vmem:[#allocation2 + $0x10] sm:$0xff] }
 0x31f   : > { %1650 = vst [vmem:[#allocation11 + $0x148] sm:$0xff] %v1586_v61  ;;  %v1590_v30 = vadd.f32 %v2793_v12, %v1514_v16  ;;  %v1591_v31 = vadd.f32 %v2788_v63, %v1515_v28  ;;  %v1517_v46 = vadd.f32 %v1453_v41, %v3056_v32  ;;  %v1518_v48 = vadd.f32 %v1454_v42, %v3057_v47  ;;  %v3061_v35 = vld [vmem:[#allocation30_spill] sm:$0xff]  ;;  %v3062_v52 = vld [vmem:[#allocation31_spill] sm:$0xff]  ;;  %v3063_v55 = vld [vmem:[#allocation32_spill] sm:$0xff] }
 0x320   : > { %1651 = vst [vmem:[#allocation11 + $0x150] sm:$0xff] %v1587_v62  ;;  %1652 = vst [vmem:[#allocation11 + $0x158] sm:$0xff] %v1588_v18  ;;  %v1592_v17 = vadd.f32 %v2793_v12, %v1516_v45  ;;  %v1519_v49 = vadd.f32 %v1455_v43, %v3058_v2  ;;  %v1520_v33 = vadd.f32 %v1456_v29, %v3059_v50  ;;  %v1465_v5 = vld [vmem:[#allocation2 + $0x158] sm:$0xff]  ;;  %v3064_v58 = vld [vmem:[#allocation33_spill] sm:$0xff] }
 0x321   : > { %1653 = vst [vmem:[#allocation11 + $0x160] sm:$0xff] %v1589_v14  ;;  %v1521_v10 = vadd.f32 %v1457_v8, %v3060_v34  ;;  %1654 = vst [vmem:[#allocation11 + $0x168] sm:$0xff] %v1590_v30  ;;  %v1593_v26 = vadd.f32 %v2788_v63, %v1517_v46  ;;  %v1594_v7 = vadd.f32 %v2793_v12, %v1518_v48  ;;  %v1467_v11 = vld [vmem:[#allocation2 + $0x58] sm:$0xff]  ;;  %v1468_v39 = vld [vmem:[#allocation2 + $0xa0] sm:$0xff] }
 0x322   : > { %1655 = vst [vmem:[#allocation11 + $0x170] sm:$0xff] %v1591_v31  ;;  %v1522_v24 = vadd.f32 %v1458_v9, %v3061_v35  ;;  %v1523_v53 = vadd.f32 %v1459_v0, %v3062_v52  ;;  %1656 = vst [vmem:[#allocation11 + $0x178] sm:$0xff] %v1592_v17  ;;  %v1595_v36 = vadd.f32 %v2788_v63, %v1519_v49  ;;  %v3065_v22 = vld [vmem:[#allocation34_spill] sm:$0xff]  ;;  %v3066_v40 = vld [vmem:[#allocation35_spill] sm:$0xff] }
 0x323   : > { %v1596_v37 = vadd.f32 %v2793_v12, %v1520_v33  ;;  %v1597_v54 = vadd.f32 %v2788_v63, %v1521_v10  ;;  %v1524_v56 = vadd.f32 %v1460_v21, %v3063_v55  ;;  %1657 = vst [vmem:[#allocation11 + $0x180] sm:$0xff] %v1593_v26  ;;  %1658 = vst [vmem:[#allocation11 + $0x188] sm:$0xff] %v1594_v7  ;;  %v3067_v3 = vld [vmem:[#allocation36_spill] sm:$0xff]  ;;  %v3068_v41 = vld [vmem:[#allocation37_spill] sm:$0xff] }
 0x324   : > { %v1598_v13 = vadd.f32 %v2793_v12, %v1522_v24  ;;  %v1599_v57 = vadd.f32 %v2788_v63, %v1523_v53  ;;  %v1525_v20 = vadd.f32 %v1461_v25, %v3064_v58  ;;  %v1526_v38 = vadd.f32 %v1462_v51, %v3065_v22  ;;  %1659 = vst [vmem:[#allocation11 + $0x190] sm:$0xff] %v1595_v36  ;;  %v3069_v1 = vld [vmem:[#allocation38_spill] sm:$0xff]  ;;  %v3070_v19 = vld [vmem:[#allocation39_spill] sm:$0xff]  ;;  %v3071_v62 = vld [vmem:[#allocation40_spill] sm:$0xff] }
 0x325   : > { %1660 = vst [vmem:[#allocation11 + $0x198] sm:$0xff] %v1596_v37  ;;  %1661 = vst [vmem:[#allocation11 + $0x1a0] sm:$0xff] %v1597_v54  ;;  %v1600_v59 = vadd.f32 %v2793_v12, %v1524_v56  ;;  %v1527_v6 = vadd.f32 %v1463_v15, %v3066_v40  ;;  %v1528_v23 = vadd.f32 %v1464_v4, %v3067_v3 }
 0x326   : > { %v1529_v42 = vadd.f32 %v1465_v5, %v3068_v41  ;;  %1662 = vst [vmem:[#allocation11 + $0x1a8] sm:$0xff] %v1598_v13  ;;  %1663 = vst [vmem:[#allocation11 + $0x1b0] sm:$0xff] %v1599_v57  ;;  %v1601_v60 = vadd.f32 %v2788_v63, %v1525_v20  ;;  %v1602_v61 = vadd.f32 %v2793_v12, %v1526_v38 }
 0x327   : > { %v1530_v16 = vadd.f32 %v1466_v27, %v3069_v1  ;;  %v1531_v28 = vadd.f32 %v1467_v11, %v3070_v19  ;;  %1664 = vst [vmem:[#allocation11 + $0x1b8] sm:$0xff] %v1600_v59  ;;  %v1603_v43 = vadd.f32 %v2788_v63, %v1527_v6  ;;  %v1604_v29 = vadd.f32 %v2793_v12, %v1528_v23 }
 0x328   : > { %v1605_v8 = vadd.f32 %v2788_v63, %v1529_v42  ;;  %v1532_v18 = vadd.f32 %v1468_v39, %v3071_v62  ;;  %1665 = vst [vmem:[#allocation11 + $0x1c0] sm:$0xff] %v1601_v60  ;;  %1666 = vst [vmem:[#allocation11 + $0x1c8] sm:$0xff] %v1602_v61 }
 0x329   : > { %v1606_v14 = vadd.f32 %v2793_v12, %v1530_v16  ;;  %v1607_v44 = vadd.f32 %v2788_v63, %v1531_v28  ;;  %1667 = vst [vmem:[#allocation11 + $0x1d0] sm:$0xff] %v1603_v43  ;;  %1668 = vst [vmem:[#allocation11 + $0x1d8] sm:$0xff] %v1604_v29 }
 0x32a   : > { %1669 = vst [vmem:[#allocation11 + $0x1e0] sm:$0xff] %v1605_v8  ;;  %v1608_v45 = vadd.f32 %v2793_v12, %v1532_v18 }
 0x32b   : > { %1670 = vst [vmem:[#allocation11 + $0x1e8] sm:$0xff] %v1606_v14  ;;  %1671 = vst [vmem:[#allocation11 + $0x1f0] sm:$0xff] %v1607_v44 }
 0x32c   : > { %1672 = vst [vmem:[#allocation11 + $0x1f8] sm:$0xff] %v1608_v45 }
 0x32d PF: > { %p1864_p2 = scmp.eq.s32.totalorder %s2236_s7, 1  ;;  %s2126_s21 = smov [#allocation11]  }
 0x32e   : > { %s1683_s15 = sshll.u32 %s2126_s21, 4  ;;  %s1684_s15 = int_to_ptr.vmem [resolvable:$true] %s1683_s15 }
 0x32f   : > { %s2031_s17 = scalar_lea.vmem %s1684_s15, 8192  ;;  %p2038_p3 = scmp.lt.s32.totalorder %s1684_s15, %s1684_s15 }
 0x330   : > { %p2032_p5 = scmp.ne.s32.totalorder %s1684_s15, %s2031_s17  ;;  %p2039_p4 = scmp.lt.s32.totalorder %s2031_s17, %s2031_s17 }
 0x332   : > { %p2033_p10 = pnand %p2032_p5, %p1864_p2  ;;  %p2040_p9 = por %p2039_p4, %p2038_p3 }
 0x334   : > { %p2034_p1 = pneg %p2033_p10 }
 0x336   : > { %p2041_p11 = pnand %p2040_p9, %p2034_p1 }
 0x338   : > { %2044 = shalt.err (!%p2041_p11)
}
 0x339   : > { %s2127_s18 = smov 256   ;;  %s2128_s6 = smov 16  }
 0x33a   : > { %1844 = dma.vmem_to_hbm [thread:$0]  (%p1864_p2), %s1684_s15, 8192, %s2956_s5, [#allocation5], %s2127_s18, %s2127_s18, %s2128_s6  }
 0x33b   : > { %2092 = dma.done.wait (%p1864_p2), [#allocation5], 8192  }
 0x33c   : > { %2094 = vsyncadd (%p1864_p2), [#allocation5], 4294959104 }
 0x33d PF: > { %s23_s23 = sadd.s32 1, %s2117_s23   ;;  %s3072_s18 = smov %s2101_s19 }
 0x33e   : > { %p20_p12 = scmp.ge.s32.totalorder %s23_s23, 4   ;;  %s3073_s19 = smov %s2105_s20 }
 0x33f   : > { %s3074_s20 = smov %s2208_s30  ;;  %s3075_s21 = smov %s2113_s22 }
 0x340   : > { %s3076_s22 = smov %s3078_s24  ;;  %22 = sbr.rel (!%p20_p12) target bundleno = 10 (0xa), region = 120 }
 0x345   :  { %1699 = vsyncpa [#allocation4], 1 }
 0x346   :  { %1701 = vsyncpa [#allocation4 + $0x1], 1 }
 0x347   :  { %1702 = vsyncpa [#allocation7], 1 }
 0x348   :  { %1704 = vsyncpa [#allocation7 + $0x1], 1 }
 0x349   :  { %1705 = vsyncpa [#allocation10], 1 }
 0x34a   :  { %1707 = vsyncpa [#allocation10 + $0x1], 1 }
 0x34b   :  { %1708 = vsyncpa [#allocation5], 1 }
 0x34c   :  { %1710 = vsyncpa [#allocation5 + $0x1], 1 }

</bundles_post_ra>
